<compile_context>
chip_gen: v7x
topology: tpu7x:2x2x1
jax: 0.10.0
libtpu: 0.0.40
codegen_flags: <defaults>
</compile_context>

<pallas_src>
import functools

import jax
import jax.numpy as jnp
from jax.experimental import pallas as pl
from jax.experimental.pallas import tpu as pltpu


# ---------------------------------------------------------------------------
# Fused Pallas kernel: 2-layer LSTM recurrence + final Linear
# ---------------------------------------------------------------------------
def fused_lstm_fc_kernel(x_ref, wih1_ref, whh1_ref, b1_ref,
                         w2_ref, b2_ref, wfc_ref, bfc_ref, out_ref,
                         *, seq_len, batch_p, hidden):
    """Single-invocation kernel (no grid); everything resident in VMEM.

    x_ref   : (T*Bp, D)   time-major, batch-padded, flattened input
    wih1_ref: (D, 4H)     layer-1 input->gates weights (gate order i,f,g,o)
    whh1_ref: (H, 4H)     layer-1 hidden->gates weights
    b1_ref  : (1, 4H)     layer-1 combined bias (b_ih + b_hh)
    w2_ref  : (2H, 4H)    layer-2 fused [wih2; whh2] weights
    b2_ref  : (1, 4H)     layer-2 combined bias
    wfc_ref : (H, Cp)     final Linear weight (transposed, lane-padded)
    bfc_ref : (1, Cp)     final Linear bias (lane-padded)
    out_ref : (Bp, Cp)    logits for the last timestep (padded)
    """
    T, Bp, H = seq_len, batch_p, hidden

    def cell(gates, c_prev):
        # 2 full-vreg EUP passes over (Bp, 4H) instead of 4 partial-lane ones;
        # only tanh(c_new) remains as the third EUP op on the serial chain.
        sg = jax.nn.sigmoid(gates)
        tg = jnp.tanh(gates)
        i = sg[:, 0 * H:1 * H]
        f = sg[:, 1 * H:2 * H]
        g = tg[:, 2 * H:3 * H]
        o = sg[:, 3 * H:4 * H]
        c_new = f * c_prev + i * g
        h_new = o * jnp.tanh(c_new)
        return h_new, c_new

    # Hoisted layer-1 input projection: one (T*Bp, D) @ (D, 4H) MXU call.  The reshape to
    # (T, Bp, 4H) is tile-aligned (Bp=8 sublanes, 4H=128 lanes), so gx1[t] is a free view.
    gx1 = (jnp.dot(x_ref[...], wih1_ref[...], preferred_element_type=jnp.float32)
           + b1_ref[...])
    gx1 = gx1.reshape(T, Bp, 4 * H)

    # Hoist weight loads and the b2 broadcast out of the unrolled loop.
    whh1 = whh1_ref[...]
    w2 = w2_ref[...]
    b2b = jnp.broadcast_to(b2_ref[...], (Bp, 4 * H))

    zeros = jnp.zeros((Bp, H), jnp.float32)
    h1, c1, h2, c2 = zeros, zeros, zeros, zeros

    # Statically unrolled recurrence (T is small & known); both layers interleaved.
    # Carried state stays in vregs; nothing touches HBM until the final store.
    for t in range(T):
        g1 = gx1[t] + jnp.dot(h1, whh1, preferred_element_type=jnp.float32)
        h1, c1 = cell(g1, c1)

        # Fused layer-2 projection: (Bp, 2H) lane concat @ (2H, 4H) -> one MXU push.
        x2 = jnp.concatenate([h1, h2], axis=1)
        g2 = jnp.dot(x2, w2, preferred_element_type=jnp.float32) + b2b
        h2, c2 = cell(g2, c2)

    # Final Linear on the last timestep's layer-2 hidden state (lane-padded, unmasked vst).
    out_ref[...] = (jnp.dot(h2, wfc_ref[...], preferred_element_type=jnp.float32)
                    + bfc_ref[...])


# ---------------------------------------------------------------------------
# Wrapper
# ---------------------------------------------------------------------------
@jax.jit
def lstm_model_forward(x_btd, params):
    """Equivalent of LSTMModel.forward: x_btd (B, T, input_size) -> (B, num_classes)."""
    B, T, D = x_btd.shape
    l1, l2 = params["lstm"]
    H = l1["whh_t"].shape[0]
    C = params["fc"]["w_t"].shape[1]

    SUB, LANE = 8, 128
    Bp = ((B + SUB - 1) // SUB) * SUB          # pad batch to sublane granularity
    Cp = ((C + LANE - 1) // LANE) * LANE       # pad logits to lane granularity

    # Zero-pad batch, go time-major, flatten so the layer-1 projection is one matmul.
    x_pad = jnp.pad(x_btd, ((0, Bp - B), (0, 0), (0, 0)))
    x_flat = jnp.transpose(x_pad, (1, 0, 2)).reshape(T * Bp, D)

    # Fuse layer-2 weights; lane-pad the FC weight/bias (tiny constant-shaped ops).
    w2 = jnp.concatenate([l2["wih_t"], l2["whh_t"]], axis=0)          # (2H, 4H)
    wfc = jnp.pad(params["fc"]["w_t"], ((0, 0), (0, Cp - C)))         # (H, Cp)
    bfc = jnp.pad(params["fc"]["b"], ((0, 0), (0, Cp - C)))           # (1, Cp)

    vmem = pl.BlockSpec(memory_space=pltpu.MemorySpace.VMEM)
    kernel = functools.partial(fused_lstm_fc_kernel, seq_len=T, batch_p=Bp, hidden=H)

    out_p = pl.pallas_call(
        kernel,
        out_shape=jax.ShapeDtypeStruct((Bp, Cp), jnp.float32),
        in_specs=[vmem] * 8,
        out_specs=vmem,
    )(x_flat,
      l1["wih_t"], l1["whh_t"], l1["bias"],
      w2, l2["bias"], wfc, bfc)

    # Padded rows / lanes carry garbage; only the real batch/classes are returned.
    return out_p[:B, :C]


# ---------------------------------------------------------------------------
# Deterministic parameter init (PyTorch-style uniform(-1/sqrt(H), 1/sqrt(H)))
# ---------------------------------------------------------------------------
def init_params(key, input_size, hidden_size, num_classes, num_layers=2):
    bound = 1.0 / jnp.sqrt(jnp.float32(hidden_size))
    params = {"lstm": [], "fc": {}}
    for layer in range(num_layers):
        d_in = input_size if layer == 0 else hidden_size
        key, k1, k2, k3, k4 = jax.random.split(key, 5)
        w_ih = jax.random.uniform(k1, (4 * hidden_size, d_in), jnp.float32, -bound, bound)
        w_hh = jax.random.uniform(k2, (4 * hidden_size, hidden_size), jnp.float32, -bound, bound)
        b_ih = jax.random.uniform(k3, (4 * hidden_size,), jnp.float32, -bound, bound)
        b_hh = jax.random.uniform(k4, (4 * hidden_size,), jnp.float32, -bound, bound)
        params["lstm"].append({
            "wih_t": w_ih.T,                                    # (D_in, 4H)
            "whh_t": w_hh.T,                                    # (H, 4H)
            "bias": (b_ih + b_hh).reshape(1, 4 * hidden_size),  # (1, 4H)
        })
    key, k1, k2 = jax.random.split(key, 3)
    fc_bound = 1.0 / jnp.sqrt(jnp.float32(hidden_size))
    w_fc = jax.random.uniform(k1, (num_classes, hidden_size), jnp.float32, -fc_bound, fc_bound)
    b_fc = jax.random.uniform(k2, (num_classes,), jnp.float32, -fc_bound, fc_bound)
    params["fc"]["w_t"] = w_fc.T                      # (H, C)
    params["fc"]["b"] = b_fc.reshape(1, num_classes)  # (1, C)
    return params


# ---------------------------------------------------------------------------
# Pure-JAX reference (for correctness check only)
# ---------------------------------------------------------------------------
def reference_forward(x_btd, params):
    h_seq = jnp.transpose(x_btd, (1, 0, 2))  # (T, B, D)
    for layer in params["lstm"]:
        B = h_seq.shape[1]
        H = layer["whh_t"].shape[0]

        def step(carry, x_t, layer=layer, H=H):
            h, c = carry
            gates = x_t @ layer["wih_t"] + h @ layer["whh_t"] + layer["bias"]
            i = jax.nn.sigmoid(gates[:, 0 * H:1 * H])
            f = jax.nn.sigmoid(gates[:, 1 * H:2 * H])
            g = jnp.tanh(gates[:, 2 * H:3 * H])
            o = jax.nn.sigmoid(gates[:, 3 * H:4 * H])
            c = f * c + i * g
            h = o * jnp.tanh(c)
            return (h, c), h

        init = (jnp.zeros((B, H), jnp.float32), jnp.zeros((B, H), jnp.float32))
        _, h_seq = jax.lax.scan(step, init, h_seq)
    return h_seq[-1] @ params["fc"]["w_t"] + params["fc"]["b"]


if __name__ == "__main__":
    B, T, INPUT_SIZE, HIDDEN, NUM_CLASSES = 2, 8, 16, 32, 4

    key = jax.random.PRNGKey(0)
    key, kx = jax.random.split(key)
    x = jax.random.normal(kx, (B, T, INPUT_SIZE), jnp.float32)  # batch_first input

    params = init_params(key, INPUT_SIZE, HIDDEN, NUM_CLASSES, num_layers=2)

    out = lstm_model_forward(x, params)
    out = jax.block_until_ready(out)

    ref = reference_forward(x, params)
    assert out.shape == (B, NUM_CLASSES)
    assert jnp.allclose(out, ref, rtol=1e-3, atol=1e-3), "mismatch vs JAX reference"

    print("KERNEL_OK")
</pallas_src>

<mosaic_0001>
module attributes {stable_mosaic.version = 11 : i64} {
  func.func @fused_lstm_fc_kernel(%arg0: memref<64x16xf32, #tpu.memory_space<vmem>>, %arg1: memref<16x128xf32, #tpu.memory_space<vmem>>, %arg2: memref<32x128xf32, #tpu.memory_space<vmem>>, %arg3: memref<1x128xf32, #tpu.memory_space<vmem>>, %arg4: memref<64x128xf32, #tpu.memory_space<vmem>>, %arg5: memref<1x128xf32, #tpu.memory_space<vmem>>, %arg6: memref<32x128xf32, #tpu.memory_space<vmem>>, %arg7: memref<1x128xf32, #tpu.memory_space<vmem>>, %arg8: memref<8x128xf32, #tpu.memory_space<vmem>>) attributes {dimension_semantics = [], scalar_prefetch = 0 : i64, scratch_operands = 0 : i64, tpu.core_type = #tpu.core_type<tc>} {
    %c0 = arith.constant 0 : index
    %c0_0 = arith.constant 0 : index
    %0 = vector.load %arg0[%c0, %c0_0] : memref<64x16xf32, #tpu.memory_space<vmem>>, vector<64x16xf32>
    %c0_1 = arith.constant 0 : index
    %c0_2 = arith.constant 0 : index
    %1 = vector.load %arg1[%c0_1, %c0_2] : memref<16x128xf32, #tpu.memory_space<vmem>>, vector<16x128xf32>
    %cst = arith.constant dense<0.000000e+00> : vector<64x128xf32>
    %2 = tpu.matmul %0, %1, %cst {dimension_numbers = #tpu.dot_dimension_numbers<[1], [0], [0], [1], [0, 0, 1, 1], [], []>} : vector<64x16xf32>, vector<16x128xf32>, vector<64x128xf32> -> vector<64x128xf32>
    %c0_3 = arith.constant 0 : index
    %c0_4 = arith.constant 0 : index
    %3 = vector.load %arg3[%c0_3, %c0_4] : memref<1x128xf32, #tpu.memory_space<vmem>>, vector<1x128xf32>
    %4 = vector.broadcast %3 : vector<1x128xf32> to vector<64x128xf32>
    %5 = arith.addf %2, %4 : vector<64x128xf32>
    %6 = vector.shape_cast %5 : vector<64x128xf32> to vector<8x8x128xf32>
    %c0_5 = arith.constant 0 : index
    %c0_6 = arith.constant 0 : index
    %7 = vector.load %arg2[%c0_5, %c0_6] : memref<32x128xf32, #tpu.memory_space<vmem>>, vector<32x128xf32>
    %c0_7 = arith.constant 0 : index
    %c0_8 = arith.constant 0 : index
    %8 = vector.load %arg4[%c0_7, %c0_8] : memref<64x128xf32, #tpu.memory_space<vmem>>, vector<64x128xf32>
    %c0_9 = arith.constant 0 : index
    %c0_10 = arith.constant 0 : index
    %9 = vector.load %arg5[%c0_9, %c0_10] : memref<1x128xf32, #tpu.memory_space<vmem>>, vector<1x128xf32>
    %10 = vector.shape_cast %9 : vector<1x128xf32> to vector<1x128xf32>
    %11 = vector.broadcast %10 : vector<1x128xf32> to vector<8x128xf32>
    %cst_11 = arith.constant 0.000000e+00 : f32
    %12 = vector.broadcast %cst_11 : f32 to vector<8x32xf32>
    %13 = vector.extract_strided_slice %6 {offsets = [0, 0, 0], sizes = [1, 8, 128], strides = [1, 1, 1]} : vector<8x8x128xf32> to vector<1x8x128xf32>
    %14 = vector.shape_cast %13 : vector<1x8x128xf32> to vector<8x128xf32>
    %cst_12 = arith.constant dense<0.000000e+00> : vector<8x128xf32>
    %15 = tpu.matmul %12, %7, %cst_12 {dimension_numbers = #tpu.dot_dimension_numbers<[1], [0], [0], [1], [0, 0, 1, 1], [], []>} : vector<8x32xf32>, vector<32x128xf32>, vector<8x128xf32> -> vector<8x128xf32>
    %16 = arith.addf %14, %15 : vector<8x128xf32>
    %17 = arith.negf %16 : vector<8x128xf32>
    %18 = math.exp %17 : vector<8x128xf32>
    %cst_13 = arith.constant 1.000000e+00 : f32
    %19 = vector.broadcast %cst_13 : f32 to vector<8x128xf32>
    %20 = arith.addf %19, %18 : vector<8x128xf32>
    %21 = arith.divf %19, %20 : vector<8x128xf32>
    %22 = math.tanh %16 : vector<8x128xf32>
    %23 = vector.extract_strided_slice %21 {offsets = [0, 0], sizes = [8, 32], strides = [1, 1]} : vector<8x128xf32> to vector<8x32xf32>
    %24 = vector.extract_strided_slice %21 {offsets = [0, 32], sizes = [8, 32], strides = [1, 1]} : vector<8x128xf32> to vector<8x32xf32>
    %25 = vector.extract_strided_slice %22 {offsets = [0, 64], sizes = [8, 32], strides = [1, 1]} : vector<8x128xf32> to vector<8x32xf32>
    %26 = vector.extract_strided_slice %21 {offsets = [0, 96], sizes = [8, 32], strides = [1, 1]} : vector<8x128xf32> to vector<8x32xf32>
    %27 = arith.mulf %24, %12 : vector<8x32xf32>
    %28 = arith.mulf %23, %25 : vector<8x32xf32>
    %29 = arith.addf %27, %28 : vector<8x32xf32>
    %30 = math.tanh %29 : vector<8x32xf32>
    %31 = arith.mulf %26, %30 : vector<8x32xf32>
    %32 = tpu.concatenate %31, %12 in 1 : vector<8x32xf32>, vector<8x32xf32> -> vector<8x64xf32>
    %cst_14 = arith.constant dense<0.000000e+00> : vector<8x128xf32>
    %33 = tpu.matmul %32, %8, %cst_14 {dimension_numbers = #tpu.dot_dimension_numbers<[1], [0], [0], [1], [0, 0, 1, 1], [], []>} : vector<8x64xf32>, vector<64x128xf32>, vector<8x128xf32> -> vector<8x128xf32>
    %34 = arith.addf %33, %11 : vector<8x128xf32>
    %35 = arith.negf %34 : vector<8x128xf32>
    %36 = math.exp %35 : vector<8x128xf32>
    %cst_15 = arith.constant 1.000000e+00 : f32
    %37 = vector.broadcast %cst_15 : f32 to vector<8x128xf32>
    %38 = arith.addf %37, %36 : vector<8x128xf32>
    %39 = arith.divf %37, %38 : vector<8x128xf32>
    %40 = math.tanh %34 : vector<8x128xf32>
    %41 = vector.extract_strided_slice %39 {offsets = [0, 0], sizes = [8, 32], strides = [1, 1]} : vector<8x128xf32> to vector<8x32xf32>
    %42 = vector.extract_strided_slice %39 {offsets = [0, 32], sizes = [8, 32], strides = [1, 1]} : vector<8x128xf32> to vector<8x32xf32>
    %43 = vector.extract_strided_slice %40 {offsets = [0, 64], sizes = [8, 32], strides = [1, 1]} : vector<8x128xf32> to vector<8x32xf32>
    %44 = vector.extract_strided_slice %39 {offsets = [0, 96], sizes = [8, 32], strides = [1, 1]} : vector<8x128xf32> to vector<8x32xf32>
    %45 = arith.mulf %42, %12 : vector<8x32xf32>
    %46 = arith.mulf %41, %43 : vector<8x32xf32>
    %47 = arith.addf %45, %46 : vector<8x32xf32>
    %48 = math.tanh %47 : vector<8x32xf32>
    %49 = arith.mulf %44, %48 : vector<8x32xf32>
    %50 = vector.extract_strided_slice %6 {offsets = [1, 0, 0], sizes = [1, 8, 128], strides = [1, 1, 1]} : vector<8x8x128xf32> to vector<1x8x128xf32>
    %51 = vector.shape_cast %50 : vector<1x8x128xf32> to vector<8x128xf32>
    %cst_16 = arith.constant dense<0.000000e+00> : vector<8x128xf32>
    %52 = tpu.matmul %31, %7, %cst_16 {dimension_numbers = #tpu.dot_dimension_numbers<[1], [0], [0], [1], [0, 0, 1, 1], [], []>} : vector<8x32xf32>, vector<32x128xf32>, vector<8x128xf32> -> vector<8x128xf32>
    %53 = arith.addf %51, %52 : vector<8x128xf32>
    %54 = arith.negf %53 : vector<8x128xf32>
    %55 = math.exp %54 : vector<8x128xf32>
    %cst_17 = arith.constant 1.000000e+00 : f32
    %56 = vector.broadcast %cst_17 : f32 to vector<8x128xf32>
    %57 = arith.addf %56, %55 : vector<8x128xf32>
    %58 = arith.divf %56, %57 : vector<8x128xf32>
    %59 = math.tanh %53 : vector<8x128xf32>
    %60 = vector.extract_strided_slice %58 {offsets = [0, 0], sizes = [8, 32], strides = [1, 1]} : vector<8x128xf32> to vector<8x32xf32>
    %61 = vector.extract_strided_slice %58 {offsets = [0, 32], sizes = [8, 32], strides = [1, 1]} : vector<8x128xf32> to vector<8x32xf32>
    %62 = vector.extract_strided_slice %59 {offsets = [0, 64], sizes = [8, 32], strides = [1, 1]} : vector<8x128xf32> to vector<8x32xf32>
    %63 = vector.extract_strided_slice %58 {offsets = [0, 96], sizes = [8, 32], strides = [1, 1]} : vector<8x128xf32> to vector<8x32xf32>
    %64 = arith.mulf %61, %29 : vector<8x32xf32>
    %65 = arith.mulf %60, %62 : vector<8x32xf32>
    %66 = arith.addf %64, %65 : vector<8x32xf32>
    %67 = math.tanh %66 : vector<8x32xf32>
    %68 = arith.mulf %63, %67 : vector<8x32xf32>
    %69 = tpu.concatenate %68, %49 in 1 : vector<8x32xf32>, vector<8x32xf32> -> vector<8x64xf32>
    %cst_18 = arith.constant dense<0.000000e+00> : vector<8x128xf32>
    %70 = tpu.matmul %69, %8, %cst_18 {dimension_numbers = #tpu.dot_dimension_numbers<[1], [0], [0], [1], [0, 0, 1, 1], [], []>} : vector<8x64xf32>, vector<64x128xf32>, vector<8x128xf32> -> vector<8x128xf32>
    %71 = arith.addf %70, %11 : vector<8x128xf32>
    %72 = arith.negf %71 : vector<8x128xf32>
    %73 = math.exp %72 : vector<8x128xf32>
    %cst_19 = arith.constant 1.000000e+00 : f32
    %74 = vector.broadcast %cst_19 : f32 to vector<8x128xf32>
    %75 = arith.addf %74, %73 : vector<8x128xf32>
    %76 = arith.divf %74, %75 : vector<8x128xf32>
    %77 = math.tanh %71 : vector<8x128xf32>
    %78 = vector.extract_strided_slice %76 {offsets = [0, 0], sizes = [8, 32], strides = [1, 1]} : vector<8x128xf32> to vector<8x32xf32>
    %79 = vector.extract_strided_slice %76 {offsets = [0, 32], sizes = [8, 32], strides = [1, 1]} : vector<8x128xf32> to vector<8x32xf32>
    %80 = vector.extract_strided_slice %77 {offsets = [0, 64], sizes = [8, 32], strides = [1, 1]} : vector<8x128xf32> to vector<8x32xf32>
    %81 = vector.extract_strided_slice %76 {offsets = [0, 96], sizes = [8, 32], strides = [1, 1]} : vector<8x128xf32> to vector<8x32xf32>
    %82 = arith.mulf %79, %47 : vector<8x32xf32>
    %83 = arith.mulf %78, %80 : vector<8x32xf32>
    %84 = arith.addf %82, %83 : vector<8x32xf32>
    %85 = math.tanh %84 : vector<8x32xf32>
    %86 = arith.mulf %81, %85 : vector<8x32xf32>
    %87 = vector.extract_strided_slice %6 {offsets = [2, 0, 0], sizes = [1, 8, 128], strides = [1, 1, 1]} : vector<8x8x128xf32> to vector<1x8x128xf32>
    %88 = vector.shape_cast %87 : vector<1x8x128xf32> to vector<8x128xf32>
    %cst_20 = arith.constant dense<0.000000e+00> : vector<8x128xf32>
    %89 = tpu.matmul %68, %7, %cst_20 {dimension_numbers = #tpu.dot_dimension_numbers<[1], [0], [0], [1], [0, 0, 1, 1], [], []>} : vector<8x32xf32>, vector<32x128xf32>, vector<8x128xf32> -> vector<8x128xf32>
    %90 = arith.addf %88, %89 : vector<8x128xf32>
    %91 = arith.negf %90 : vector<8x128xf32>
    %92 = math.exp %91 : vector<8x128xf32>
    %cst_21 = arith.constant 1.000000e+00 : f32
    %93 = vector.broadcast %cst_21 : f32 to vector<8x128xf32>
    %94 = arith.addf %93, %92 : vector<8x128xf32>
    %95 = arith.divf %93, %94 : vector<8x128xf32>
    %96 = math.tanh %90 : vector<8x128xf32>
    %97 = vector.extract_strided_slice %95 {offsets = [0, 0], sizes = [8, 32], strides = [1, 1]} : vector<8x128xf32> to vector<8x32xf32>
    %98 = vector.extract_strided_slice %95 {offsets = [0, 32], sizes = [8, 32], strides = [1, 1]} : vector<8x128xf32> to vector<8x32xf32>
    %99 = vector.extract_strided_slice %96 {offsets = [0, 64], sizes = [8, 32], strides = [1, 1]} : vector<8x128xf32> to vector<8x32xf32>
    %100 = vector.extract_strided_slice %95 {offsets = [0, 96], sizes = [8, 32], strides = [1, 1]} : vector<8x128xf32> to vector<8x32xf32>
    %101 = arith.mulf %98, %66 : vector<8x32xf32>
    %102 = arith.mulf %97, %99 : vector<8x32xf32>
    %103 = arith.addf %101, %102 : vector<8x32xf32>
    %104 = math.tanh %103 : vector<8x32xf32>
    %105 = arith.mulf %100, %104 : vector<8x32xf32>
    %106 = tpu.concatenate %105, %86 in 1 : vector<8x32xf32>, vector<8x32xf32> -> vector<8x64xf32>
    %cst_22 = arith.constant dense<0.000000e+00> : vector<8x128xf32>
    %107 = tpu.matmul %106, %8, %cst_22 {dimension_numbers = #tpu.dot_dimension_numbers<[1], [0], [0], [1], [0, 0, 1, 1], [], []>} : vector<8x64xf32>, vector<64x128xf32>, vector<8x128xf32> -> vector<8x128xf32>
    %108 = arith.addf %107, %11 : vector<8x128xf32>
    %109 = arith.negf %108 : vector<8x128xf32>
    %110 = math.exp %109 : vector<8x128xf32>
    %cst_23 = arith.constant 1.000000e+00 : f32
    %111 = vector.broadcast %cst_23 : f32 to vector<8x128xf32>
    %112 = arith.addf %111, %110 : vector<8x128xf32>
    %113 = arith.divf %111, %112 : vector<8x128xf32>
    %114 = math.tanh %108 : vector<8x128xf32>
    %115 = vector.extract_strided_slice %113 {offsets = [0, 0], sizes = [8, 32], strides = [1, 1]} : vector<8x128xf32> to vector<8x32xf32>
    %116 = vector.extract_strided_slice %113 {offsets = [0, 32], sizes = [8, 32], strides = [1, 1]} : vector<8x128xf32> to vector<8x32xf32>
    %117 = vector.extract_strided_slice %114 {offsets = [0, 64], sizes = [8, 32], strides = [1, 1]} : vector<8x128xf32> to vector<8x32xf32>
    %118 = vector.extract_strided_slice %113 {offsets = [0, 96], sizes = [8, 32], strides = [1, 1]} : vector<8x128xf32> to vector<8x32xf32>
    %119 = arith.mulf %116, %84 : vector<8x32xf32>
    %120 = arith.mulf %115, %117 : vector<8x32xf32>
    %121 = arith.addf %119, %120 : vector<8x32xf32>
    %122 = math.tanh %121 : vector<8x32xf32>
    %123 = arith.mulf %118, %122 : vector<8x32xf32>
    %124 = vector.extract_strided_slice %6 {offsets = [3, 0, 0], sizes = [1, 8, 128], strides = [1, 1, 1]} : vector<8x8x128xf32> to vector<1x8x128xf32>
    %125 = vector.shape_cast %124 : vector<1x8x128xf32> to vector<8x128xf32>
    %cst_24 = arith.constant dense<0.000000e+00> : vector<8x128xf32>
    %126 = tpu.matmul %105, %7, %cst_24 {dimension_numbers = #tpu.dot_dimension_numbers<[1], [0], [0], [1], [0, 0, 1, 1], [], []>} : vector<8x32xf32>, vector<32x128xf32>, vector<8x128xf32> -> vector<8x128xf32>
    %127 = arith.addf %125, %126 : vector<8x128xf32>
    %128 = arith.negf %127 : vector<8x128xf32>
    %129 = math.exp %128 : vector<8x128xf32>
    %cst_25 = arith.constant 1.000000e+00 : f32
    %130 = vector.broadcast %cst_25 : f32 to vector<8x128xf32>
    %131 = arith.addf %130, %129 : vector<8x128xf32>
    %132 = arith.divf %130, %131 : vector<8x128xf32>
    %133 = math.tanh %127 : vector<8x128xf32>
    %134 = vector.extract_strided_slice %132 {offsets = [0, 0], sizes = [8, 32], strides = [1, 1]} : vector<8x128xf32> to vector<8x32xf32>
    %135 = vector.extract_strided_slice %132 {offsets = [0, 32], sizes = [8, 32], strides = [1, 1]} : vector<8x128xf32> to vector<8x32xf32>
    %136 = vector.extract_strided_slice %133 {offsets = [0, 64], sizes = [8, 32], strides = [1, 1]} : vector<8x128xf32> to vector<8x32xf32>
    %137 = vector.extract_strided_slice %132 {offsets = [0, 96], sizes = [8, 32], strides = [1, 1]} : vector<8x128xf32> to vector<8x32xf32>
    %138 = arith.mulf %135, %103 : vector<8x32xf32>
    %139 = arith.mulf %134, %136 : vector<8x32xf32>
    %140 = arith.addf %138, %139 : vector<8x32xf32>
    %141 = math.tanh %140 : vector<8x32xf32>
    %142 = arith.mulf %137, %141 : vector<8x32xf32>
    %143 = tpu.concatenate %142, %123 in 1 : vector<8x32xf32>, vector<8x32xf32> -> vector<8x64xf32>
    %cst_26 = arith.constant dense<0.000000e+00> : vector<8x128xf32>
    %144 = tpu.matmul %143, %8, %cst_26 {dimension_numbers = #tpu.dot_dimension_numbers<[1], [0], [0], [1], [0, 0, 1, 1], [], []>} : vector<8x64xf32>, vector<64x128xf32>, vector<8x128xf32> -> vector<8x128xf32>
    %145 = arith.addf %144, %11 : vector<8x128xf32>
    %146 = arith.negf %145 : vector<8x128xf32>
    %147 = math.exp %146 : vector<8x128xf32>
    %cst_27 = arith.constant 1.000000e+00 : f32
    %148 = vector.broadcast %cst_27 : f32 to vector<8x128xf32>
    %149 = arith.addf %148, %147 : vector<8x128xf32>
    %150 = arith.divf %148, %149 : vector<8x128xf32>
    %151 = math.tanh %145 : vector<8x128xf32>
    %152 = vector.extract_strided_slice %150 {offsets = [0, 0], sizes = [8, 32], strides = [1, 1]} : vector<8x128xf32> to vector<8x32xf32>
    %153 = vector.extract_strided_slice %150 {offsets = [0, 32], sizes = [8, 32], strides = [1, 1]} : vector<8x128xf32> to vector<8x32xf32>
    %154 = vector.extract_strided_slice %151 {offsets = [0, 64], sizes = [8, 32], strides = [1, 1]} : vector<8x128xf32> to vector<8x32xf32>
    %155 = vector.extract_strided_slice %150 {offsets = [0, 96], sizes = [8, 32], strides = [1, 1]} : vector<8x128xf32> to vector<8x32xf32>
    %156 = arith.mulf %153, %121 : vector<8x32xf32>
    %157 = arith.mulf %152, %154 : vector<8x32xf32>
    %158 = arith.addf %156, %157 : vector<8x32xf32>
    %159 = math.tanh %158 : vector<8x32xf32>
    %160 = arith.mulf %155, %159 : vector<8x32xf32>
    %161 = vector.extract_strided_slice %6 {offsets = [4, 0, 0], sizes = [1, 8, 128], strides = [1, 1, 1]} : vector<8x8x128xf32> to vector<1x8x128xf32>
    %162 = vector.shape_cast %161 : vector<1x8x128xf32> to vector<8x128xf32>
    %cst_28 = arith.constant dense<0.000000e+00> : vector<8x128xf32>
    %163 = tpu.matmul %142, %7, %cst_28 {dimension_numbers = #tpu.dot_dimension_numbers<[1], [0], [0], [1], [0, 0, 1, 1], [], []>} : vector<8x32xf32>, vector<32x128xf32>, vector<8x128xf32> -> vector<8x128xf32>
    %164 = arith.addf %162, %163 : vector<8x128xf32>
    %165 = arith.negf %164 : vector<8x128xf32>
    %166 = math.exp %165 : vector<8x128xf32>
    %cst_29 = arith.constant 1.000000e+00 : f32
    %167 = vector.broadcast %cst_29 : f32 to vector<8x128xf32>
    %168 = arith.addf %167, %166 : vector<8x128xf32>
    %169 = arith.divf %167, %168 : vector<8x128xf32>
    %170 = math.tanh %164 : vector<8x128xf32>
    %171 = vector.extract_strided_slice %169 {offsets = [0, 0], sizes = [8, 32], strides = [1, 1]} : vector<8x128xf32> to vector<8x32xf32>
    %172 = vector.extract_strided_slice %169 {offsets = [0, 32], sizes = [8, 32], strides = [1, 1]} : vector<8x128xf32> to vector<8x32xf32>
    %173 = vector.extract_strided_slice %170 {offsets = [0, 64], sizes = [8, 32], strides = [1, 1]} : vector<8x128xf32> to vector<8x32xf32>
    %174 = vector.extract_strided_slice %169 {offsets = [0, 96], sizes = [8, 32], strides = [1, 1]} : vector<8x128xf32> to vector<8x32xf32>
    %175 = arith.mulf %172, %140 : vector<8x32xf32>
    %176 = arith.mulf %171, %173 : vector<8x32xf32>
    %177 = arith.addf %175, %176 : vector<8x32xf32>
    %178 = math.tanh %177 : vector<8x32xf32>
    %179 = arith.mulf %174, %178 : vector<8x32xf32>
    %180 = tpu.concatenate %179, %160 in 1 : vector<8x32xf32>, vector<8x32xf32> -> vector<8x64xf32>
    %cst_30 = arith.constant dense<0.000000e+00> : vector<8x128xf32>
    %181 = tpu.matmul %180, %8, %cst_30 {dimension_numbers = #tpu.dot_dimension_numbers<[1], [0], [0], [1], [0, 0, 1, 1], [], []>} : vector<8x64xf32>, vector<64x128xf32>, vector<8x128xf32> -> vector<8x128xf32>
    %182 = arith.addf %181, %11 : vector<8x128xf32>
    %183 = arith.negf %182 : vector<8x128xf32>
    %184 = math.exp %183 : vector<8x128xf32>
    %cst_31 = arith.constant 1.000000e+00 : f32
    %185 = vector.broadcast %cst_31 : f32 to vector<8x128xf32>
    %186 = arith.addf %185, %184 : vector<8x128xf32>
    %187 = arith.divf %185, %186 : vector<8x128xf32>
    %188 = math.tanh %182 : vector<8x128xf32>
    %189 = vector.extract_strided_slice %187 {offsets = [0, 0], sizes = [8, 32], strides = [1, 1]} : vector<8x128xf32> to vector<8x32xf32>
    %190 = vector.extract_strided_slice %187 {offsets = [0, 32], sizes = [8, 32], strides = [1, 1]} : vector<8x128xf32> to vector<8x32xf32>
    %191 = vector.extract_strided_slice %188 {offsets = [0, 64], sizes = [8, 32], strides = [1, 1]} : vector<8x128xf32> to vector<8x32xf32>
    %192 = vector.extract_strided_slice %187 {offsets = [0, 96], sizes = [8, 32], strides = [1, 1]} : vector<8x128xf32> to vector<8x32xf32>
    %193 = arith.mulf %190, %158 : vector<8x32xf32>
    %194 = arith.mulf %189, %191 : vector<8x32xf32>
    %195 = arith.addf %193, %194 : vector<8x32xf32>
    %196 = math.tanh %195 : vector<8x32xf32>
    %197 = arith.mulf %192, %196 : vector<8x32xf32>
    %198 = vector.extract_strided_slice %6 {offsets = [5, 0, 0], sizes = [1, 8, 128], strides = [1, 1, 1]} : vector<8x8x128xf32> to vector<1x8x128xf32>
    %199 = vector.shape_cast %198 : vector<1x8x128xf32> to vector<8x128xf32>
    %cst_32 = arith.constant dense<0.000000e+00> : vector<8x128xf32>
    %200 = tpu.matmul %179, %7, %cst_32 {dimension_numbers = #tpu.dot_dimension_numbers<[1], [0], [0], [1], [0, 0, 1, 1], [], []>} : vector<8x32xf32>, vector<32x128xf32>, vector<8x128xf32> -> vector<8x128xf32>
    %201 = arith.addf %199, %200 : vector<8x128xf32>
    %202 = arith.negf %201 : vector<8x128xf32>
    %203 = math.exp %202 : vector<8x128xf32>
    %cst_33 = arith.constant 1.000000e+00 : f32
    %204 = vector.broadcast %cst_33 : f32 to vector<8x128xf32>
    %205 = arith.addf %204, %203 : vector<8x128xf32>
    %206 = arith.divf %204, %205 : vector<8x128xf32>
    %207 = math.tanh %201 : vector<8x128xf32>
    %208 = vector.extract_strided_slice %206 {offsets = [0, 0], sizes = [8, 32], strides = [1, 1]} : vector<8x128xf32> to vector<8x32xf32>
    %209 = vector.extract_strided_slice %206 {offsets = [0, 32], sizes = [8, 32], strides = [1, 1]} : vector<8x128xf32> to vector<8x32xf32>
    %210 = vector.extract_strided_slice %207 {offsets = [0, 64], sizes = [8, 32], strides = [1, 1]} : vector<8x128xf32> to vector<8x32xf32>
    %211 = vector.extract_strided_slice %206 {offsets = [0, 96], sizes = [8, 32], strides = [1, 1]} : vector<8x128xf32> to vector<8x32xf32>
    %212 = arith.mulf %209, %177 : vector<8x32xf32>
    %213 = arith.mulf %208, %210 : vector<8x32xf32>
    %214 = arith.addf %212, %213 : vector<8x32xf32>
    %215 = math.tanh %214 : vector<8x32xf32>
    %216 = arith.mulf %211, %215 : vector<8x32xf32>
    %217 = tpu.concatenate %216, %197 in 1 : vector<8x32xf32>, vector<8x32xf32> -> vector<8x64xf32>
    %cst_34 = arith.constant dense<0.000000e+00> : vector<8x128xf32>
    %218 = tpu.matmul %217, %8, %cst_34 {dimension_numbers = #tpu.dot_dimension_numbers<[1], [0], [0], [1], [0, 0, 1, 1], [], []>} : vector<8x64xf32>, vector<64x128xf32>, vector<8x128xf32> -> vector<8x128xf32>
    %219 = arith.addf %218, %11 : vector<8x128xf32>
    %220 = arith.negf %219 : vector<8x128xf32>
    %221 = math.exp %220 : vector<8x128xf32>
    %cst_35 = arith.constant 1.000000e+00 : f32
    %222 = vector.broadcast %cst_35 : f32 to vector<8x128xf32>
    %223 = arith.addf %222, %221 : vector<8x128xf32>
    %224 = arith.divf %222, %223 : vector<8x128xf32>
    %225 = math.tanh %219 : vector<8x128xf32>
    %226 = vector.extract_strided_slice %224 {offsets = [0, 0], sizes = [8, 32], strides = [1, 1]} : vector<8x128xf32> to vector<8x32xf32>
    %227 = vector.extract_strided_slice %224 {offsets = [0, 32], sizes = [8, 32], strides = [1, 1]} : vector<8x128xf32> to vector<8x32xf32>
    %228 = vector.extract_strided_slice %225 {offsets = [0, 64], sizes = [8, 32], strides = [1, 1]} : vector<8x128xf32> to vector<8x32xf32>
    %229 = vector.extract_strided_slice %224 {offsets = [0, 96], sizes = [8, 32], strides = [1, 1]} : vector<8x128xf32> to vector<8x32xf32>
    %230 = arith.mulf %227, %195 : vector<8x32xf32>
    %231 = arith.mulf %226, %228 : vector<8x32xf32>
    %232 = arith.addf %230, %231 : vector<8x32xf32>
    %233 = math.tanh %232 : vector<8x32xf32>
    %234 = arith.mulf %229, %233 : vector<8x32xf32>
    %235 = vector.extract_strided_slice %6 {offsets = [6, 0, 0], sizes = [1, 8, 128], strides = [1, 1, 1]} : vector<8x8x128xf32> to vector<1x8x128xf32>
    %236 = vector.shape_cast %235 : vector<1x8x128xf32> to vector<8x128xf32>
    %cst_36 = arith.constant dense<0.000000e+00> : vector<8x128xf32>
    %237 = tpu.matmul %216, %7, %cst_36 {dimension_numbers = #tpu.dot_dimension_numbers<[1], [0], [0], [1], [0, 0, 1, 1], [], []>} : vector<8x32xf32>, vector<32x128xf32>, vector<8x128xf32> -> vector<8x128xf32>
    %238 = arith.addf %236, %237 : vector<8x128xf32>
    %239 = arith.negf %238 : vector<8x128xf32>
    %240 = math.exp %239 : vector<8x128xf32>
    %cst_37 = arith.constant 1.000000e+00 : f32
    %241 = vector.broadcast %cst_37 : f32 to vector<8x128xf32>
    %242 = arith.addf %241, %240 : vector<8x128xf32>
    %243 = arith.divf %241, %242 : vector<8x128xf32>
    %244 = math.tanh %238 : vector<8x128xf32>
    %245 = vector.extract_strided_slice %243 {offsets = [0, 0], sizes = [8, 32], strides = [1, 1]} : vector<8x128xf32> to vector<8x32xf32>
    %246 = vector.extract_strided_slice %243 {offsets = [0, 32], sizes = [8, 32], strides = [1, 1]} : vector<8x128xf32> to vector<8x32xf32>
    %247 = vector.extract_strided_slice %244 {offsets = [0, 64], sizes = [8, 32], strides = [1, 1]} : vector<8x128xf32> to vector<8x32xf32>
    %248 = vector.extract_strided_slice %243 {offsets = [0, 96], sizes = [8, 32], strides = [1, 1]} : vector<8x128xf32> to vector<8x32xf32>
    %249 = arith.mulf %246, %214 : vector<8x32xf32>
    %250 = arith.mulf %245, %247 : vector<8x32xf32>
    %251 = arith.addf %249, %250 : vector<8x32xf32>
    %252 = math.tanh %251 : vector<8x32xf32>
    %253 = arith.mulf %248, %252 : vector<8x32xf32>
    %254 = tpu.concatenate %253, %234 in 1 : vector<8x32xf32>, vector<8x32xf32> -> vector<8x64xf32>
    %cst_38 = arith.constant dense<0.000000e+00> : vector<8x128xf32>
    %255 = tpu.matmul %254, %8, %cst_38 {dimension_numbers = #tpu.dot_dimension_numbers<[1], [0], [0], [1], [0, 0, 1, 1], [], []>} : vector<8x64xf32>, vector<64x128xf32>, vector<8x128xf32> -> vector<8x128xf32>
    %256 = arith.addf %255, %11 : vector<8x128xf32>
    %257 = arith.negf %256 : vector<8x128xf32>
    %258 = math.exp %257 : vector<8x128xf32>
    %cst_39 = arith.constant 1.000000e+00 : f32
    %259 = vector.broadcast %cst_39 : f32 to vector<8x128xf32>
    %260 = arith.addf %259, %258 : vector<8x128xf32>
    %261 = arith.divf %259, %260 : vector<8x128xf32>
    %262 = math.tanh %256 : vector<8x128xf32>
    %263 = vector.extract_strided_slice %261 {offsets = [0, 0], sizes = [8, 32], strides = [1, 1]} : vector<8x128xf32> to vector<8x32xf32>
    %264 = vector.extract_strided_slice %261 {offsets = [0, 32], sizes = [8, 32], strides = [1, 1]} : vector<8x128xf32> to vector<8x32xf32>
    %265 = vector.extract_strided_slice %262 {offsets = [0, 64], sizes = [8, 32], strides = [1, 1]} : vector<8x128xf32> to vector<8x32xf32>
    %266 = vector.extract_strided_slice %261 {offsets = [0, 96], sizes = [8, 32], strides = [1, 1]} : vector<8x128xf32> to vector<8x32xf32>
    %267 = arith.mulf %264, %232 : vector<8x32xf32>
    %268 = arith.mulf %263, %265 : vector<8x32xf32>
    %269 = arith.addf %267, %268 : vector<8x32xf32>
    %270 = math.tanh %269 : vector<8x32xf32>
    %271 = arith.mulf %266, %270 : vector<8x32xf32>
    %272 = vector.extract_strided_slice %6 {offsets = [7, 0, 0], sizes = [1, 8, 128], strides = [1, 1, 1]} : vector<8x8x128xf32> to vector<1x8x128xf32>
    %273 = vector.shape_cast %272 : vector<1x8x128xf32> to vector<8x128xf32>
    %cst_40 = arith.constant dense<0.000000e+00> : vector<8x128xf32>
    %274 = tpu.matmul %253, %7, %cst_40 {dimension_numbers = #tpu.dot_dimension_numbers<[1], [0], [0], [1], [0, 0, 1, 1], [], []>} : vector<8x32xf32>, vector<32x128xf32>, vector<8x128xf32> -> vector<8x128xf32>
    %275 = arith.addf %273, %274 : vector<8x128xf32>
    %276 = arith.negf %275 : vector<8x128xf32>
    %277 = math.exp %276 : vector<8x128xf32>
    %cst_41 = arith.constant 1.000000e+00 : f32
    %278 = vector.broadcast %cst_41 : f32 to vector<8x128xf32>
    %279 = arith.addf %278, %277 : vector<8x128xf32>
    %280 = arith.divf %278, %279 : vector<8x128xf32>
    %281 = math.tanh %275 : vector<8x128xf32>
    %282 = vector.extract_strided_slice %280 {offsets = [0, 0], sizes = [8, 32], strides = [1, 1]} : vector<8x128xf32> to vector<8x32xf32>
    %283 = vector.extract_strided_slice %280 {offsets = [0, 32], sizes = [8, 32], strides = [1, 1]} : vector<8x128xf32> to vector<8x32xf32>
    %284 = vector.extract_strided_slice %281 {offsets = [0, 64], sizes = [8, 32], strides = [1, 1]} : vector<8x128xf32> to vector<8x32xf32>
    %285 = vector.extract_strided_slice %280 {offsets = [0, 96], sizes = [8, 32], strides = [1, 1]} : vector<8x128xf32> to vector<8x32xf32>
    %286 = arith.mulf %283, %251 : vector<8x32xf32>
    %287 = arith.mulf %282, %284 : vector<8x32xf32>
    %288 = arith.addf %286, %287 : vector<8x32xf32>
    %289 = math.tanh %288 : vector<8x32xf32>
    %290 = arith.mulf %285, %289 : vector<8x32xf32>
    %291 = tpu.concatenate %290, %271 in 1 : vector<8x32xf32>, vector<8x32xf32> -> vector<8x64xf32>
    %cst_42 = arith.constant dense<0.000000e+00> : vector<8x128xf32>
    %292 = tpu.matmul %291, %8, %cst_42 {dimension_numbers = #tpu.dot_dimension_numbers<[1], [0], [0], [1], [0, 0, 1, 1], [], []>} : vector<8x64xf32>, vector<64x128xf32>, vector<8x128xf32> -> vector<8x128xf32>
    %293 = arith.addf %292, %11 : vector<8x128xf32>
    %294 = arith.negf %293 : vector<8x128xf32>
    %295 = math.exp %294 : vector<8x128xf32>
    %cst_43 = arith.constant 1.000000e+00 : f32
    %296 = vector.broadcast %cst_43 : f32 to vector<8x128xf32>
    %297 = arith.addf %296, %295 : vector<8x128xf32>
    %298 = arith.divf %296, %297 : vector<8x128xf32>
    %299 = math.tanh %293 : vector<8x128xf32>
    %300 = vector.extract_strided_slice %298 {offsets = [0, 0], sizes = [8, 32], strides = [1, 1]} : vector<8x128xf32> to vector<8x32xf32>
    %301 = vector.extract_strided_slice %298 {offsets = [0, 32], sizes = [8, 32], strides = [1, 1]} : vector<8x128xf32> to vector<8x32xf32>
    %302 = vector.extract_strided_slice %299 {offsets = [0, 64], sizes = [8, 32], strides = [1, 1]} : vector<8x128xf32> to vector<8x32xf32>
    %303 = vector.extract_strided_slice %298 {offsets = [0, 96], sizes = [8, 32], strides = [1, 1]} : vector<8x128xf32> to vector<8x32xf32>
    %304 = arith.mulf %301, %269 : vector<8x32xf32>
    %305 = arith.mulf %300, %302 : vector<8x32xf32>
    %306 = arith.addf %304, %305 : vector<8x32xf32>
    %307 = math.tanh %306 : vector<8x32xf32>
    %308 = arith.mulf %303, %307 : vector<8x32xf32>
    %c0_44 = arith.constant 0 : index
    %c0_45 = arith.constant 0 : index
    %309 = vector.load %arg6[%c0_44, %c0_45] : memref<32x128xf32, #tpu.memory_space<vmem>>, vector<32x128xf32>
    %cst_46 = arith.constant dense<0.000000e+00> : vector<8x128xf32>
    %310 = tpu.matmul %308, %309, %cst_46 {dimension_numbers = #tpu.dot_dimension_numbers<[1], [0], [0], [1], [0, 0, 1, 1], [], []>} : vector<8x32xf32>, vector<32x128xf32>, vector<8x128xf32> -> vector<8x128xf32>
    %c0_47 = arith.constant 0 : index
    %c0_48 = arith.constant 0 : index
    %311 = vector.load %arg7[%c0_47, %c0_48] : memref<1x128xf32, #tpu.memory_space<vmem>>, vector<1x128xf32>
    %312 = vector.broadcast %311 : vector<1x128xf32> to vector<8x128xf32>
    %313 = arith.addf %310, %312 : vector<8x128xf32>
    %c0_49 = arith.constant 0 : index
    %c0_50 = arith.constant 0 : index
    %314 = vector.load %arg8[%c0_49, %c0_50] : memref<8x128xf32, #tpu.memory_space<vmem>>, vector<8x128xf32>
    tpu.vector_store %arg8[%c0_49, %c0_50], %313 {strides = array<i32>} : memref<8x128xf32, #tpu.memory_space<vmem>>, vector<8x128xf32>,
    return
  }
}

</mosaic_0001>

<bundles_post_ra>
// kernel: lstm_model_forward.1
= control target key start
LH: loop header
LB: loop body
LE: loop exit
PB: predicated region body
PF: predicated region fallthrough
CT: control target
= control target key end

     0   :  { %vm46_vm0 = vcmask 130048   ;;  %v2633_v0 = vmov 0.0|0.0   ;;  %vm2634_vm1 = vmmov 0   ;;  %v2635_v4 = vmov 0.0   ;;  %s2636_s21 = smov 64   ;;  %s3099_s1 = inlined_call_operand.vmem [shape: f32[16,128], index: 1, kind: input, shape index: {}]   ;;  %s3100_s2 = inlined_call_operand.vmem [shape: f32[32,128], index: 2, kind: input, shape index: {}]   ;;  %s3101_s0 = inlined_call_operand.vmem [shape: f32[64,16], index: 0, kind: input, shape index: {}]   ;;  %s3102_s3 = inlined_call_operand.vmem [shape: f32[1,128], index: 3, kind: input, shape index: {}]   ;;  %s3103_s4 = inlined_call_operand.vmem [shape: f32[64,128], index: 4, kind: input, shape index: {}]   ;;  %s3104_s5 = inlined_call_operand.vmem [shape: f32[1,128], index: 5, kind: input, shape index: {}]   ;;  %s3105_s6 = inlined_call_operand.vmem [shape: f32[32,128], index: 6, kind: input, shape index: {}]   ;;  %s3106_s7 = inlined_call_operand.vmem [shape: f32[1,128], index: 7, kind: input, shape index: {}]   ;;  %s3107_s8 = inlined_call_operand.vmem [shape: f32[8,128], index: 8, kind: output, shape index: {}]  }
   0x1   :  { %2350 = vmatprep.subr.bf16.mxu1 %v2633_v0  ;;  %v37_v1 = vld [vmem:[%s3099_s1] sm:$0xff]  ;;  %v38_v2 = vld [vmem:[%s3099_s1 + $0x8] sm:$0xff]  ;;  %2103 = vmatprep.mubr.msk.f32.mxu1 %vm2634_vm1, %v2635_v4  ;;  %v178_v9 = vld [vmem:[%s3100_s2 + $0x10] sm:$0xff]  ;;  %vm195_vm2 = vcmask 261120   ;;  %vm299_vm3 = vcmask 523264  }
   0x2   :  { %v176_v3 = vld [vmem:[%s3100_s2] sm:$0xff]  ;;  %v2346_v5 = vpack.c.bf16 %v38_v2, %v37_v1  ;;  %v177_v6 = vld [vmem:[%s3100_s2 + $0x8] sm:$0xff]  ;;  %v179_v10 = vld [vmem:[%s3100_s2 + $0x18] sm:$0xff] }
   0x3   :  { %v29_v7 = vld [vmem:[%s3101_s0] sm:$0xff]  ;;  %v2701_v8 = vpack.c.bf16 %v177_v6, %v176_v3  ;;  %v30_v11 = vld [vmem:[%s3101_s0 + $0x8] sm:$0xff]  ;;  %v2714_v12 = vpack.c.bf16 %v179_v10, %v178_v9  ;;  %v31_v30 = vld [vmem:[%s3101_s0 + $0x10] sm:$0xff] }
   0x4   :  { %2083 = vmatprep.mubr.msk.f32.mxu0 %vm46_vm0, %v29_v7  ;;  %2347 = vmatprep.subr.bf16.mxu0 %v2346_v5  ;;  %v2731_v13 = vld [vmem:[%s3102_s3] ss:$0 sm:$0xff]  ;;  %s2637_s3 = smov 32   ;;  %v32_v31 = vld [vmem:[%s3101_s0 + $0x18] sm:$0xff]  ;;  %v181_v34 = vld [vmem:[%s3103_s4 + $0x8] sm:$0xff] }
   0x5   :  { %2352 = vmatpush3.bf16.msra.mxu1 %v2701_v8  ;;  %2349 = vmatpush3.bf16.msra.mxu0 %v2346_v5  ;;  %v33_v32 = vld [vmem:[%s3101_s0 + $0x20] sm:$0xff]  ;;  %v182_v35 = vld [vmem:[%s3103_s4 + $0x10] sm:$0xff]  ;;  %v183_v37 = vld [vmem:[%s3103_s4 + $0x18] sm:$0xff] }
   0x6   :  { %2353 = vmatprep.subr.bf16.mxu1 %v2633_v0  ;;  %2356 = vmatprep.subr.bf16.mxu0 %v2633_v0  ;;  %v180_v33 = vld [vmem:[%s3103_s4] sm:$0xff]  ;;  %v34_v38 = vld [vmem:[%s3101_s0 + $0x28] sm:$0xff]  ;;  %v2771_v39 = vpack.c.bf16 %v183_v37, %v182_v35  ;;  %v35_v40 = vld [vmem:[%s3101_s0 + $0x30] sm:$0xff] }
   0x7   :  { %v2760_v36 = vpack.c.bf16 %v181_v34, %v180_v33  ;;  %v184_v41 = vld [vmem:[%s3103_s4 + $0x20] sm:$0xff]  ;;  %v185_v42 = vld [vmem:[%s3103_s4 + $0x28] sm:$0xff]  ;;  %v36_v43 = vld [vmem:[%s3101_s0 + $0x38] sm:$0xff] }
   0x8   :  { %2084 = vmatmul.mubr.msk.f32.vlgmr.msra.gmra.mrb[0].mxu0 %vm46_vm0, %v30_v11  ;;  %v2789_v44 = vpack.c.bf16 %v185_v42, %v184_v41  ;;  %v186_v45 = vld [vmem:[%s3103_s4 + $0x30] sm:$0xff]  ;;  %v187_v46 = vld [vmem:[%s3103_s4 + $0x38] sm:$0xff]  ;;  %v2845_v60 = vld [vmem:[%s3104_s5] ss:$0 sm:$0xff] }
   0x9   :  { %2355 = vmatpush3.bf16.msra.mxu1 %v2714_v12  ;;  %2086 = vmatprep.mubr.msk.f32.mxu0 %vm46_vm0, %v31_v30  ;;  %v2803_v48 = vpack.c.bf16 %v187_v46, %v186_v45 }
   0xa   :  { %2368 = vmatprep.subr.bf16.mxu1 %v2633_v0  ;;  %2358 = vmatpush3.bf16.msra.mxu0 %v2760_v36 }
   0xb   :  { %2359 = vmatprep.subr.bf16.mxu0 %v2633_v0 }
   0xc   :  { %2104 = vmatmul.mubr.f32.vlgmr.msra.gmra.mrb[0].mxu1 %v2635_v4  ;;  %2087 = vmatmul.mubr.msk.f32.gmra.mrb[2].mxu0 %vm46_vm0, %v32_v31 }
   0xd   :  { %2370 = vmatpush3.bf16.msra.mxu1 %v2701_v8  ;;  %2133 = vmatprep.mubr.msk.f32.mxu1 %vm2634_vm1, %v2635_v4 }
   0xe   :  { %2371 = vmatprep.subr.bf16.mxu1 %v2633_v0  ;;  %2089 = vmatprep.mubr.msk.f32.mxu0 %vm46_vm0, %v33_v32 }
   0xf   :  { %2361 = vmatpush3.bf16.msra.mxu0 %v2771_v39 }
  0x10   :  { %2090 = vmatmul.mubr.msk.f32.gmra.mrb[4].mxu0 %vm46_vm0, %v34_v38  ;;  %2362 = vmatprep.subr.bf16.mxu0 %v2633_v0 }
  0x11   :  { %2373 = vmatpush3.bf16.msra.mxu1 %v2714_v12  ;;  %2092 = vmatprep.mubr.msk.f32.mxu0 %vm46_vm0, %v35_v40 }
  0x12   :  { %2374 = vmatprep.subr.bf16.mxu1 %v2633_v0 }
  0x13   :  { %2364 = vmatpush3.bf16.msra.mxu0 %v2789_v44 }
  0x14   :  { %2093 = vmatmul.mubr.msk.f32.gmra.mrb[6].mxu0 %vm46_vm0, %v36_v43  ;;  %2365 = vmatprep.subr.bf16.mxu0 %v2633_v0 }
  0x15   :  { %2122 = vmatprep.mubr.msk.f32.mxu0 %vm2634_vm1, %v2635_v4 }
  0x17   :  { %2367 = vmatpush3.bf16.msra.mxu0 %v2803_v48 }
  0x18   :  { %2386 = vmatprep.subr.bf16.mxu0 %v2633_v0 }
  0xdb   :  { %v2733_v14 = vpop.f32.mrb[0].mxu0 }
  0xdc   :  { %v137_v15 = vpop.f32.mrb[1].mxu0  ;;  %v143_v59 = vadd.f32 %v2733_v14, %v2731_v13 }
  0xdd   :  { %v138_v16 = vadd.f32 %v2731_v13, %v137_v15 }
  0xdf   :  { %v265_v17 = vpop.f32.mrb[0].mxu1  ;;  %v2809_v51 = vpop.f32.mrb[2].mxu0 }
  0xe0   :  { %v269_v18 = vadd.f32 %v265_v17, %v138_v16  ;;  %v2105_v19 = vpop.f32.mrb[1].mxu1  ;;  %v2811_v52 = vpop.f32.mrb[3].mxu0 }
  0xe1   :  { %v148_v38 = vadd.f32 %v2731_v13, %v2811_v52 }
  0xe2   :  { %2505 = vtanh.f32 %v269_v18  ;;  %v1919_v21 = vmul.f32 -1.442695, %v269_v18 }
  0xe3   :  { %v2813_v53 = vpop.f32.mrb[4].mxu0 }
  0xe4   :  { %2507 = vpow2.f32 %v1919_v21  ;;  %v2815_v54 = vpop.f32.mrb[5].mxu0 }
  0xe7   :  { %v2817_v55 = vpop.f32.mrb[6].mxu0 }
  0xe8   :  { %v2819_v56 = vpop.f32.mrb[7].mxu0 }
  0xec   :  { %v2506_v20 = vpop.eup %2505 }
  0xed   :  { %279 = vrot.lane.b32.xlu0 %v2506_v20, %s2636_s21 }
  0xee   :  { %v2508_v22 = vpop.eup %2507 }
  0xef   :  { %v273_v23 = vadd.f32 1.0, %v2508_v22 }
  0xf1   :  { %2509 = vrcp.f32 %v273_v23 }
  0xfb   :  { %v2510_v24 = vpop.eup %2509 }
  0xfc   :  { %v277_v27 = vmul.f32 0.0, %v2510_v24 }
 0x15f   :  { %v280_v25 = vpop.permute.xlu0 %279 }
 0x160   :  { %v282_v26 = vmul.f32 %v2510_v24, %v280_v25 }
 0x162   :  { %284 = vrot.lane.b32.xlu0 %v282_v26, %s2637_s3 }
 0x1d4   :  { %v285_v28 = vpop.permute.xlu0 %284 }
 0x1d5   :  { %v2738_v29 = vadd.f32 %v285_v28, %v277_v27 }
 0x1d7   :  { %2511 = vtanh.f32 %v2738_v29 }
 0x1e1   :  { %v2512_v47 = vpop.eup %2511 }
 0x1e2   :  { %290 = vrot.lane.b32.xlu1 %v2512_v47, %s2636_s21 }
 0x254   :  { %v291_v49 = vpop.permute.xlu1 %290 }
 0x255   :  { %v293_v50 = vmul.f32 %v2510_v24, %v291_v49 }
 0x257   :  { %295 = vrot.lane.b32.xlu1 %v293_v50, %s2637_s3 }
 0x2c9   :  { %v296_v57 = vpop.permute.xlu1 %295 }
 0x2ca   :  { %v298_v58 = vsel %vm195_vm2, %v296_v57, 0.0  ;;  %2134 = vmatmul.mubr.msk.f32.vlgmr.msra.gmra.mrb[2].mxu1 %vm195_vm2, %v296_v57 }
 0x2cb   :  { %2123 = vmatmul.mubr.msk.f32.vlgmr.msra.gmra.mrb[8].mxu0 %vm299_vm3, %v298_v58  ;;  %2376 = vmatpush3.bf16.msra.mxu1 %v2760_v36 }
 0x2cc   :  { %2377 = vmatprep.subr.bf16.mxu1 %v2633_v0  ;;  %2388 = vmatpush3.bf16.msra.mxu0 %v2701_v8 }
 0x2cd   :  { %2389 = vmatprep.subr.bf16.mxu0 %v2633_v0  ;;  %2163 = vmatprep.mubr.msk.f32.mxu0 %vm2634_vm1, %v2635_v4 }
 0x2ce   :  { %2152 = vmatprep.mubr.msk.f32.mxu1 %vm2634_vm1, %v2635_v4 }
 0x2cf   :  { %2379 = vmatpush3.bf16.msra.mxu1 %v2771_v39 }
 0x2d0   :  { %2380 = vmatprep.subr.bf16.mxu1 %v2633_v0  ;;  %2391 = vmatpush3.bf16.msra.mxu0 %v2714_v12 }
 0x2d1   :  { %2392 = vmatprep.subr.bf16.mxu0 %v2633_v0 }
 0x2d3   :  { %2382 = vmatpush3.bf16.msra.mxu1 %v2789_v44 }
 0x2d4   :  { %2383 = vmatprep.subr.bf16.mxu1 %v2633_v0 }
 0x2d7   :  { %2385 = vmatpush3.bf16.msra.mxu1 %v2803_v48 }
 0x2d8   :  { %2404 = vmatprep.subr.bf16.mxu1 %v2633_v0 }
 0x39d   :  { %v465_v61 = vpop.f32.mrb[2].mxu1 }
 0x39e   :  { %v469_v62 = vadd.f32 %v465_v61, %v143_v59  ;;  %v369_v63 = vpop.f32.mrb[8].mxu0  ;;  %v2135_v1 = vpop.f32.mrb[3].mxu1 }
 0x39f   :  { %v370_v2 = vadd.f32 %v2845_v60, %v369_v63  ;;  %v2124_v3 = vpop.f32.mrb[9].mxu0 }
 0x3a0   :  { %2513 = vtanh.f32 %v469_v62  ;;  %v1923_v7 = vmul.f32 -1.442695, %v469_v62 }
 0x3a1   :  { %2515 = vtanh.f32 %v370_v2  ;;  %v1921_v9 = vmul.f32 -1.442695, %v370_v2 }
 0x3a2   :  { %2517 = vpow2.f32 %v1923_v7 }
 0x3a3   :  { %2519 = vpow2.f32 %v1921_v9 }
 0x3aa   :  { %v2514_v5 = vpop.eup %2513 }
 0x3ab   :  { %v2516_v6 = vpop.eup %2515  ;;  %479 = vrot.lane.b32.xlu1 %v2514_v5, %s2636_s21 }
 0x3ac   :  { %382 = vrot.lane.b32.xlu0 %v2516_v6, %s2636_s21  ;;  %v2518_v10 = vpop.eup %2517 }
 0x3ad   :  { %v2520_v11 = vpop.eup %2519  ;;  %v473_v14 = vadd.f32 1.0, %v2518_v10 }
 0x3ae   :  { %v376_v15 = vadd.f32 1.0, %v2520_v11 }
 0x3af   :  { %2521 = vrcp.f32 %v473_v14 }
 0x3b0   :  { %2523 = vrcp.f32 %v376_v15 }
 0x3b9   :  { %v2522_v16 = vpop.eup %2521 }
 0x3ba   :  { %v2524_v18 = vpop.eup %2523  ;;  %v477_v22 = vmul.f32 %v2522_v16, %v2738_v29 }
 0x3bb   :  { %v380_v24 = vmul.f32 0.0, %v2524_v18 }
 0x41d   :  { %v480_v17 = vpop.permute.xlu1 %479 }
 0x41e   :  { %v482_v19 = vmul.f32 %v2522_v16, %v480_v17  ;;  %v383_v20 = vpop.permute.xlu0 %382 }
 0x41f   :  { %v385_v21 = vmul.f32 %v2524_v18, %v383_v20 }
 0x420   :  { %484 = vrot.lane.b32.xlu1 %v482_v19, %s2637_s3 }
 0x421   :  { %387 = vrot.lane.b32.xlu0 %v385_v21, %s2637_s3 }
 0x492   :  { %v485_v23 = vpop.permute.xlu1 %484 }
 0x493   :  { %v2853_v25 = vadd.f32 %v485_v23, %v477_v22  ;;  %v388_v26 = vpop.permute.xlu0 %387 }
 0x494   :  { %v2855_v27 = vadd.f32 %v388_v26, %v380_v24  ;;  %v153_v24 = vadd.f32 %v2809_v51, %v2731_v13 }
 0x495   :  { %2525 = vtanh.f32 %v2853_v25 }
 0x496   :  { %2527 = vtanh.f32 %v2855_v27 }
 0x49f   :  { %v2526_v28 = vpop.eup %2525 }
 0x4a0   :  { %v2528_v30 = vpop.eup %2527  ;;  %490 = vrot.lane.b32.xlu1 %v2526_v28, %s2636_s21 }
 0x4a1   :  { %393 = vrot.lane.b32.xlu0 %v2528_v30, %s2636_s21 }
 0x512   :  { %v491_v31 = vpop.permute.xlu1 %490 }
 0x513   :  { %v493_v32 = vmul.f32 %v2522_v16, %v491_v31  ;;  %v394_v29 = vpop.permute.xlu0 %393 }
 0x514   :  { %v396_v33 = vmul.f32 %v2524_v18, %v394_v29 }
 0x515   :  { %495 = vrot.lane.b32.xlu0 %v493_v32, %s2637_s3 }
 0x516   :  { %499 = vrot.lane.b32.xlu1 %v396_v33, %s2636_s21 }
 0x587   :  { %v496_v34 = vpop.permute.xlu0 %495 }
 0x588   :  { %v500_v35 = vpop.permute.xlu1 %499  ;;  %2164 = vmatmul.mubr.msk.f32.vlgmr.msra.gmra.mrb[10].mxu0 %vm195_vm2, %v496_v34 }
 0x589   :  { %v502_v37 = vsel %vm195_vm2, %v496_v34, %v500_v35  ;;  %2394 = vmatpush3.bf16.msra.mxu0 %v2760_v36  ;;  %2182 = vmatprep.mubr.msk.f32.mxu0 %vm2634_vm1, %v2635_v4 }
 0x58a   :  { %2153 = vmatmul.mubr.msk.f32.vlgmr.msra.gmra.mrb[4].mxu1 %vm299_vm3, %v502_v37  ;;  %2395 = vmatprep.subr.bf16.mxu0 %v2633_v0 }
 0x58b   :  { %2406 = vmatpush3.bf16.msra.mxu1 %v2701_v8  ;;  %2193 = vmatprep.mubr.msk.f32.mxu1 %vm2634_vm1, %v2635_v4 }
 0x58c   :  { %2407 = vmatprep.subr.bf16.mxu1 %v2633_v0 }
 0x58d   :  { %2397 = vmatpush3.bf16.msra.mxu0 %v2771_v39 }
 0x58e   :  { %2398 = vmatprep.subr.bf16.mxu0 %v2633_v0 }
 0x58f   :  { %2409 = vmatpush3.bf16.msra.mxu1 %v2714_v12 }
 0x590   :  { %2410 = vmatprep.subr.bf16.mxu1 %v2633_v0 }
 0x591   :  { %2400 = vmatpush3.bf16.msra.mxu0 %v2789_v44 }
 0x592   :  { %2401 = vmatprep.subr.bf16.mxu0 %v2633_v0 }
 0x595   :  { %2403 = vmatpush3.bf16.msra.mxu0 %v2803_v48 }
 0x596   :  { %2422 = vmatprep.subr.bf16.mxu0 %v2633_v0 }
 0x65b   :  { %v668_v40 = vpop.f32.mrb[10].mxu0 }
 0x65c   :  { %v672_v41 = vadd.f32 %v668_v40, %v148_v38  ;;  %v2165_v42 = vpop.f32.mrb[11].mxu0 }
 0x65d   :  { %v572_v43 = vpop.f32.mrb[4].mxu1 }
 0x65e   :  { %2529 = vtanh.f32 %v672_v41  ;;  %v573_v45 = vadd.f32 %v2845_v60, %v572_v43  ;;  %v2154_v46 = vpop.f32.mrb[5].mxu1  ;;  %v1927_v50 = vmul.f32 -1.442695, %v672_v41 }
 0x660   :  { %2531 = vtanh.f32 %v573_v45  ;;  %v1925_v57 = vmul.f32 -1.442695, %v573_v45 }
 0x661   :  { %2533 = vpow2.f32 %v1927_v50 }
 0x662   :  { %2535 = vpow2.f32 %v1925_v57 }
 0x668   :  { %v2530_v47 = vpop.eup %2529 }
 0x669   :  { %682 = vrot.lane.b32.xlu1 %v2530_v47, %s2636_s21 }
 0x66a   :  { %v2532_v49 = vpop.eup %2531 }
 0x66b   :  { %585 = vrot.lane.b32.xlu0 %v2532_v49, %s2636_s21  ;;  %v2534_v52 = vpop.eup %2533 }
 0x66c   :  { %v2536_v58 = vpop.eup %2535  ;;  %v676_v59 = vadd.f32 1.0, %v2534_v52 }
 0x66d   :  { %v579_v61 = vadd.f32 1.0, %v2536_v58 }
 0x66e   :  { %2537 = vrcp.f32 %v676_v59 }
 0x66f   :  { %2539 = vrcp.f32 %v579_v61 }
 0x678   :  { %v2538_v62 = vpop.eup %2537 }
 0x679   :  { %v2540_v2 = vpop.eup %2539  ;;  %v680_v6 = vmul.f32 %v2538_v62, %v2853_v25 }
 0x67a   :  { %v583_v10 = vmul.f32 %v2540_v2, %v2855_v27 }
 0x6db   :  { %v683_v63 = vpop.permute.xlu1 %682 }
 0x6dc   :  { %v685_v1 = vmul.f32 %v2538_v62, %v683_v63 }
 0x6dd   :  { %v586_v3 = vpop.permute.xlu0 %585 }
 0x6de   :  { %687 = vrot.lane.b32.xlu1 %v685_v1, %s2637_s3  ;;  %v588_v5 = vmul.f32 %v2540_v2, %v586_v3 }
 0x6e0   :  { %590 = vrot.lane.b32.xlu0 %v588_v5, %s2637_s3 }
 0x750   :  { %v688_v7 = vpop.permute.xlu1 %687 }
 0x751   :  { %v2890_v9 = vadd.f32 %v688_v7, %v680_v6  ;;  %v158_v7 = vadd.f32 %v2731_v13, %v2815_v54 }
 0x752   :  { %v591_v11 = vpop.permute.xlu0 %590 }
 0x753   :  { %2541 = vtanh.f32 %v2890_v9  ;;  %v2894_v14 = vadd.f32 %v591_v11, %v583_v10 }
 0x755   :  { %2543 = vtanh.f32 %v2894_v14 }
 0x75d   :  { %v2542_v15 = vpop.eup %2541 }
 0x75e   :  { %693 = vrot.lane.b32.xlu1 %v2542_v15, %s2636_s21 }
 0x75f   :  { %v2544_v16 = vpop.eup %2543 }
 0x760   :  { %596 = vrot.lane.b32.xlu0 %v2544_v16, %s2636_s21 }
 0x7d0   :  { %v694_v17 = vpop.permute.xlu1 %693 }
 0x7d1   :  { %v696_v18 = vmul.f32 %v2538_v62, %v694_v17 }
 0x7d2   :  { %v597_v19 = vpop.permute.xlu0 %596 }
 0x7d3   :  { %698 = vrot.lane.b32.xlu0 %v696_v18, %s2637_s3  ;;  %v599_v20 = vmul.f32 %v2540_v2, %v597_v19 }
 0x7d5   :  { %702 = vrot.lane.b32.xlu1 %v599_v20, %s2636_s21 }
 0x845   :  { %v699_v21 = vpop.permute.xlu0 %698 }
 0x846   :  { %2194 = vmatmul.mubr.msk.f32.vlgmr.msra.gmra.mrb[6].mxu1 %vm195_vm2, %v699_v21 }
 0x847   :  { %2412 = vmatpush3.bf16.msra.mxu1 %v2760_v36  ;;  %2212 = vmatprep.mubr.msk.f32.mxu1 %vm2634_vm1, %v2635_v4  ;;  %v703_v22 = vpop.permute.xlu1 %702 }
 0x848   :  { %2413 = vmatprep.subr.bf16.mxu1 %v2633_v0  ;;  %v705_v23 = vsel %vm195_vm2, %v699_v21, %v703_v22 }
 0x849   :  { %2183 = vmatmul.mubr.msk.f32.vlgmr.msra.gmra.mrb[12].mxu0 %vm299_vm3, %v705_v23 }
 0x84a   :  { %2424 = vmatpush3.bf16.msra.mxu0 %v2701_v8  ;;  %2223 = vmatprep.mubr.msk.f32.mxu0 %vm2634_vm1, %v2635_v4 }
 0x84b   :  { %2415 = vmatpush3.bf16.msra.mxu1 %v2771_v39  ;;  %2425 = vmatprep.subr.bf16.mxu0 %v2633_v0 }
 0x84c   :  { %2416 = vmatprep.subr.bf16.mxu1 %v2633_v0 }
 0x84e   :  { %2427 = vmatpush3.bf16.msra.mxu0 %v2714_v12 }
 0x84f   :  { %2418 = vmatpush3.bf16.msra.mxu1 %v2789_v44  ;;  %2428 = vmatprep.subr.bf16.mxu0 %v2633_v0 }
 0x850   :  { %2419 = vmatprep.subr.bf16.mxu1 %v2633_v0 }
 0x853   :  { %2421 = vmatpush3.bf16.msra.mxu1 %v2803_v48 }
 0x854   :  { %2440 = vmatprep.subr.bf16.mxu1 %v2633_v0 }
 0x919   :  { %v871_v25 = vpop.f32.mrb[6].mxu1 }
 0x91a   :  { %v875_v26 = vadd.f32 %v871_v25, %v153_v24  ;;  %v2195_v27 = vpop.f32.mrb[7].mxu1 }
 0x91c   :  { %2545 = vtanh.f32 %v875_v26  ;;  %v775_v28 = vpop.f32.mrb[12].mxu0  ;;  %v1931_v33 = vmul.f32 -1.442695, %v875_v26 }
 0x91d   :  { %v776_v30 = vadd.f32 %v2845_v60, %v775_v28  ;;  %v2184_v31 = vpop.f32.mrb[13].mxu0 }
 0x91f   :  { %2547 = vtanh.f32 %v776_v30  ;;  %v1929_v34 = vmul.f32 -1.442695, %v776_v30 }
 0x920   :  { %2549 = vpow2.f32 %v1931_v33 }
 0x921   :  { %2551 = vpow2.f32 %v1929_v34 }
 0x926   :  { %v2546_v32 = vpop.eup %2545 }
 0x927   :  { %885 = vrot.lane.b32.xlu1 %v2546_v32, %s2636_s21 }
 0x929   :  { %v2548_v29 = vpop.eup %2547 }
 0x92a   :  { %788 = vrot.lane.b32.xlu0 %v2548_v29, %s2636_s21  ;;  %v2550_v51 = vpop.eup %2549 }
 0x92b   :  { %v879_v35 = vadd.f32 1.0, %v2550_v51  ;;  %v2552_v37 = vpop.eup %2551 }
 0x92c   :  { %v782_v38 = vadd.f32 1.0, %v2552_v37 }
 0x92d   :  { %2553 = vrcp.f32 %v879_v35 }
 0x92e   :  { %2555 = vrcp.f32 %v782_v38 }
 0x937   :  { %v2554_v40 = vpop.eup %2553 }
 0x938   :  { %v2556_v43 = vpop.eup %2555  ;;  %v883_v47 = vmul.f32 %v2554_v40, %v2890_v9 }
 0x939   :  { %v786_v57 = vmul.f32 %v2556_v43, %v2894_v14 }
 0x999   :  { %v886_v41 = vpop.permute.xlu1 %885 }
 0x99a   :  { %v888_v42 = vmul.f32 %v2554_v40, %v886_v41 }
 0x99c   :  { %890 = vrot.lane.b32.xlu1 %v888_v42, %s2637_s3  ;;  %v789_v45 = vpop.permute.xlu0 %788 }
 0x99d   :  { %v791_v46 = vmul.f32 %v2556_v43, %v789_v45 }
 0x99f   :  { %793 = vrot.lane.b32.xlu0 %v791_v46, %s2637_s3 }
 0xa0e   :  { %v891_v49 = vpop.permute.xlu1 %890 }
 0xa0f   :  { %v2928_v50 = vadd.f32 %v891_v49, %v883_v47  ;;  %v163_v47 = vadd.f32 %v2813_v53, %v2731_v13 }
 0xa11   :  { %2557 = vtanh.f32 %v2928_v50  ;;  %v794_v52 = vpop.permute.xlu0 %793 }
 0xa12   :  { %v2932_v58 = vadd.f32 %v794_v52, %v786_v57 }
 0xa14   :  { %2559 = vtanh.f32 %v2932_v58 }
 0xa1b   :  { %v2558_v59 = vpop.eup %2557 }
 0xa1c   :  { %896 = vrot.lane.b32.xlu1 %v2558_v59, %s2636_s21 }
 0xa1e   :  { %v2560_v61 = vpop.eup %2559 }
 0xa1f   :  { %799 = vrot.lane.b32.xlu0 %v2560_v61, %s2636_s21 }
 0xa8e   :  { %v897_v62 = vpop.permute.xlu1 %896 }
 0xa8f   :  { %v899_v63 = vmul.f32 %v2554_v40, %v897_v62 }
 0xa91   :  { %901 = vrot.lane.b32.xlu0 %v899_v63, %s2637_s3  ;;  %v800_v1 = vpop.permute.xlu0 %799 }
 0xa92   :  { %v802_v2 = vmul.f32 %v2556_v43, %v800_v1 }
 0xa94   :  { %905 = vrot.lane.b32.xlu1 %v802_v2, %s2636_s21 }
 0xb03   :  { %v902_v3 = vpop.permute.xlu0 %901 }
 0xb04   :  { %2224 = vmatmul.mubr.msk.f32.vlgmr.msra.gmra.mrb[14].mxu0 %vm195_vm2, %v902_v3 }
 0xb05   :  { %2430 = vmatpush3.bf16.msra.mxu0 %v2760_v36  ;;  %2242 = vmatprep.mubr.msk.f32.mxu0 %vm2634_vm1, %v2635_v4 }
 0xb06   :  { %2431 = vmatprep.subr.bf16.mxu0 %v2633_v0  ;;  %v906_v5 = vpop.permute.xlu1 %905 }
 0xb07   :  { %v908_v6 = vsel %vm195_vm2, %v902_v3, %v906_v5 }
 0xb08   :  { %2213 = vmatmul.mubr.msk.f32.vlgmr.msra.gmra.mrb[8].mxu1 %vm299_vm3, %v908_v6 }
 0xb09   :  { %2433 = vmatpush3.bf16.msra.mxu0 %v2771_v39  ;;  %2442 = vmatpush3.bf16.msra.mxu1 %v2701_v8 }
 0xb0a   :  { %2434 = vmatprep.subr.bf16.mxu0 %v2633_v0  ;;  %2443 = vmatprep.subr.bf16.mxu1 %v2633_v0 }
 0xb0b   :  { %2253 = vmatprep.mubr.msk.f32.mxu1 %vm2634_vm1, %v2635_v4 }
 0xb0d   :  { %2436 = vmatpush3.bf16.msra.mxu0 %v2789_v44  ;;  %2445 = vmatpush3.bf16.msra.mxu1 %v2714_v12 }
 0xb0e   :  { %2437 = vmatprep.subr.bf16.mxu0 %v2633_v0  ;;  %2446 = vmatprep.subr.bf16.mxu1 %v2633_v0 }
 0xb11   :  { %2439 = vmatpush3.bf16.msra.mxu0 %v2803_v48 }
 0xb12   :  { %2458 = vmatprep.subr.bf16.mxu0 %v2633_v0 }
 0xbd7   :  { %v1074_v9 = vpop.f32.mrb[14].mxu0 }
 0xbd8   :  { %v1078_v10 = vadd.f32 %v1074_v9, %v158_v7  ;;  %v2225_v11 = vpop.f32.mrb[15].mxu0 }
 0xbda   :  { %2561 = vtanh.f32 %v1078_v10  ;;  %v1935_v19 = vmul.f32 -1.442695, %v1078_v10 }
 0xbdb   :  { %v978_v14 = vpop.f32.mrb[8].mxu1 }
 0xbdc   :  { %v979_v15 = vadd.f32 %v2845_v60, %v978_v14  ;;  %v2214_v16 = vpop.f32.mrb[9].mxu1 }
 0xbde   :  { %2563 = vtanh.f32 %v979_v15  ;;  %v1933_v20 = vmul.f32 -1.442695, %v979_v15 }
 0xbdf   :  { %2565 = vpow2.f32 %v1935_v19 }
 0xbe0   :  { %2567 = vpow2.f32 %v1933_v20 }
 0xbe4   :  { %v2562_v17 = vpop.eup %2561 }
 0xbe5   :  { %1088 = vrot.lane.b32.xlu1 %v2562_v17, %s2636_s21 }
 0xbe8   :  { %v2564_v18 = vpop.eup %2563 }
 0xbe9   :  { %991 = vrot.lane.b32.xlu0 %v2564_v18, %s2636_s21  ;;  %v2566_v54 = vpop.eup %2565 }
 0xbea   :  { %v1082_v21 = vadd.f32 1.0, %v2566_v54  ;;  %v2568_v22 = vpop.eup %2567 }
 0xbeb   :  { %v985_v23 = vadd.f32 1.0, %v2568_v22 }
 0xbec   :  { %2569 = vrcp.f32 %v1082_v21 }
 0xbed   :  { %2571 = vrcp.f32 %v985_v23 }
 0xbf6   :  { %v2570_v24 = vpop.eup %2569 }
 0xbf7   :  { %v2572_v27 = vpop.eup %2571  ;;  %v1086_v31 = vmul.f32 %v2570_v24, %v2928_v50 }
 0xbf8   :  { %v989_v33 = vmul.f32 %v2572_v27, %v2932_v58 }
 0xc57   :  { %v1089_v25 = vpop.permute.xlu1 %1088 }
 0xc58   :  { %v1091_v26 = vmul.f32 %v2570_v24, %v1089_v25 }
 0xc5a   :  { %1093 = vrot.lane.b32.xlu1 %v1091_v26, %s2637_s3 }
 0xc5b   :  { %v992_v28 = vpop.permute.xlu0 %991 }
 0xc5c   :  { %v994_v30 = vmul.f32 %v2572_v27, %v992_v28 }
 0xc5e   :  { %996 = vrot.lane.b32.xlu0 %v994_v30, %s2637_s3 }
 0xccc   :  { %v1094_v32 = vpop.permute.xlu1 %1093 }
 0xccd   :  { %v2966_v29 = vadd.f32 %v1094_v32, %v1086_v31 }
 0xccf   :  { %2573 = vtanh.f32 %v2966_v29 }
 0xcd0   :  { %v997_v34 = vpop.permute.xlu0 %996 }
 0xcd1   :  { %v2970_v51 = vadd.f32 %v997_v34, %v989_v33 }
 0xcd3   :  { %2575 = vtanh.f32 %v2970_v51 }
 0xcd9   :  { %v2574_v35 = vpop.eup %2573 }
 0xcda   :  { %1099 = vrot.lane.b32.xlu1 %v2574_v35, %s2636_s21 }
 0xcdd   :  { %v2576_v37 = vpop.eup %2575 }
 0xcde   :  { %1002 = vrot.lane.b32.xlu0 %v2576_v37, %s2636_s21 }
 0xd4c   :  { %v1100_v38 = vpop.permute.xlu1 %1099 }
 0xd4d   :  { %v1102_v40 = vmul.f32 %v2570_v24, %v1100_v38 }
 0xd4f   :  { %1104 = vrot.lane.b32.xlu0 %v1102_v40, %s2637_s3 }
 0xd50   :  { %v1003_v41 = vpop.permute.xlu0 %1002 }
 0xd51   :  { %v1005_v42 = vmul.f32 %v2572_v27, %v1003_v41 }
 0xd53   :  { %1108 = vrot.lane.b32.xlu1 %v1005_v42, %s2636_s21 }
 0xdc1   :  { %v1105_v43 = vpop.permute.xlu0 %1104 }
 0xdc2   :  { %2254 = vmatmul.mubr.msk.f32.vlgmr.msra.gmra.mrb[10].mxu1 %vm195_vm2, %v1105_v43 }
 0xdc3   :  { %2448 = vmatpush3.bf16.msra.mxu1 %v2760_v36  ;;  %2272 = vmatprep.mubr.msk.f32.mxu1 %vm2634_vm1, %v2635_v4 }
 0xdc4   :  { %2449 = vmatprep.subr.bf16.mxu1 %v2633_v0 }
 0xdc5   :  { %v1109_v45 = vpop.permute.xlu1 %1108 }
 0xdc6   :  { %v1111_v46 = vsel %vm195_vm2, %v1105_v43, %v1109_v45 }
 0xdc7   :  { %2451 = vmatpush3.bf16.msra.mxu1 %v2771_v39  ;;  %2243 = vmatmul.mubr.msk.f32.vlgmr.msra.gmra.mrb[16].mxu0 %vm299_vm3, %v1111_v46 }
 0xdc8   :  { %2452 = vmatprep.subr.bf16.mxu1 %v2633_v0  ;;  %2460 = vmatpush3.bf16.msra.mxu0 %v2701_v8 }
 0xdc9   :  { %2283 = vmatprep.mubr.msk.f32.mxu0 %vm2634_vm1, %v2635_v4  ;;  %2461 = vmatprep.subr.bf16.mxu0 %v2633_v0 }
 0xdcb   :  { %2454 = vmatpush3.bf16.msra.mxu1 %v2789_v44 }
 0xdcc   :  { %2455 = vmatprep.subr.bf16.mxu1 %v2633_v0  ;;  %2463 = vmatpush3.bf16.msra.mxu0 %v2714_v12 }
 0xdcd   :  { %2464 = vmatprep.subr.bf16.mxu0 %v2633_v0 }
 0xdcf   :  { %2457 = vmatpush3.bf16.msra.mxu1 %v2803_v48 }
 0xdd0   :  { %2476 = vmatprep.subr.bf16.mxu1 %v2633_v0 }
 0xe95   :  { %v1277_v49 = vpop.f32.mrb[10].mxu1 }
 0xe96   :  { %v1281_v50 = vadd.f32 %v1277_v49, %v163_v47  ;;  %v2255_v57 = vpop.f32.mrb[11].mxu1 }
 0xe98   :  { %2577 = vtanh.f32 %v1281_v50  ;;  %v1939_v63 = vmul.f32 -1.442695, %v1281_v50 }
 0xe9a   :  { %v1181_v52 = vpop.f32.mrb[16].mxu0 }
 0xe9b   :  { %v1182_v58 = vadd.f32 %v2845_v60, %v1181_v52  ;;  %v2244_v59 = vpop.f32.mrb[17].mxu0 }
 0xe9d   :  { %2579 = vtanh.f32 %v1182_v58  ;;  %v1937_v1 = vmul.f32 -1.442695, %v1182_v58 }
 0xe9e   :  { %2581 = vpow2.f32 %v1939_v63 }
 0xe9f   :  { %2583 = vpow2.f32 %v1937_v1 }
 0xea2   :  { %v2578_v61 = vpop.eup %2577 }
 0xea3   :  { %1291 = vrot.lane.b32.xlu1 %v2578_v61, %s2636_s21 }
 0xea7   :  { %v2580_v62 = vpop.eup %2579 }
 0xea8   :  { %1194 = vrot.lane.b32.xlu0 %v2580_v62, %s2636_s21  ;;  %v2582_v53 = vpop.eup %2581 }
 0xea9   :  { %v1285_v2 = vadd.f32 1.0, %v2582_v53  ;;  %v2584_v3 = vpop.eup %2583 }
 0xeaa   :  { %v1188_v5 = vadd.f32 1.0, %v2584_v3 }
 0xeab   :  { %2585 = vrcp.f32 %v1285_v2 }
 0xeac   :  { %2587 = vrcp.f32 %v1188_v5 }
 0xeb5   :  { %v2586_v6 = vpop.eup %2585 }
 0xeb6   :  { %v2588_v10 = vpop.eup %2587  ;;  %v1289_v15 = vmul.f32 %v2586_v6, %v2966_v29 }
 0xeb7   :  { %v1192_v18 = vmul.f32 %v2588_v10, %v2970_v51 }
 0xf15   :  { %v1292_v7 = vpop.permute.xlu1 %1291 }
 0xf16   :  { %v1294_v9 = vmul.f32 %v2586_v6, %v1292_v7 }
 0xf18   :  { %1296 = vrot.lane.b32.xlu1 %v1294_v9, %s2637_s3 }
 0xf1a   :  { %v1195_v11 = vpop.permute.xlu0 %1194 }
 0xf1b   :  { %v1197_v14 = vmul.f32 %v2588_v10, %v1195_v11 }
 0xf1d   :  { %1199 = vrot.lane.b32.xlu0 %v1197_v14, %s2637_s3 }
 0xf8a   :  { %v1297_v16 = vpop.permute.xlu1 %1296 }
 0xf8b   :  { %v3004_v17 = vadd.f32 %v1297_v16, %v1289_v15 }
 0xf8d   :  { %2589 = vtanh.f32 %v3004_v17 }
 0xf8f   :  { %v1200_v19 = vpop.permute.xlu0 %1199 }
 0xf90   :  { %v3008_v20 = vadd.f32 %v1200_v19, %v1192_v18 }
 0xf92   :  { %2591 = vtanh.f32 %v3008_v20 }
 0xf97   :  { %v2590_v54 = vpop.eup %2589 }
 0xf98   :  { %1302 = vrot.lane.b32.xlu1 %v2590_v54, %s2636_s21 }
 0xf9c   :  { %v2592_v21 = vpop.eup %2591 }
 0xf9d   :  { %1205 = vrot.lane.b32.xlu0 %v2592_v21, %s2636_s21 }
0x100a   :  { %v1303_v22 = vpop.permute.xlu1 %1302 }
0x100b   :  { %v1305_v23 = vmul.f32 %v2586_v6, %v1303_v22 }
0x100d   :  { %1307 = vrot.lane.b32.xlu0 %v1305_v23, %s2637_s3 }
0x100f   :  { %v1206_v24 = vpop.permute.xlu0 %1205 }
0x1010   :  { %v1208_v25 = vmul.f32 %v2588_v10, %v1206_v24 }
0x1012   :  { %1311 = vrot.lane.b32.xlu1 %v1208_v25, %s2636_s21 }
0x107f   :  { %v1308_v26 = vpop.permute.xlu0 %1307 }
0x1080   :  { %2284 = vmatmul.mubr.msk.f32.vlgmr.msra.gmra.mrb[18].mxu0 %vm195_vm2, %v1308_v26 }
0x1081   :  { %2466 = vmatpush3.bf16.msra.mxu0 %v2760_v36  ;;  %2302 = vmatprep.mubr.msk.f32.mxu0 %vm2634_vm1, %v2635_v4 }
0x1082   :  { %2467 = vmatprep.subr.bf16.mxu0 %v2633_v0 }
0x1084   :  { %v1312_v27 = vpop.permute.xlu1 %1311 }
0x1085   :  { %2469 = vmatpush3.bf16.msra.mxu0 %v2771_v39  ;;  %v1314_v28 = vsel %vm195_vm2, %v1308_v26, %v1312_v27 }
0x1086   :  { %2470 = vmatprep.subr.bf16.mxu0 %v2633_v0  ;;  %2273 = vmatmul.mubr.msk.f32.vlgmr.msra.gmra.mrb[12].mxu1 %vm299_vm3, %v1314_v28 }
0x1087   :  { %2478 = vmatpush3.bf16.msra.mxu1 %v2701_v8  ;;  %2313 = vmatprep.mubr.msk.f32.mxu1 %vm2634_vm1, %v2635_v4  ;;  %v168_v8 = vadd.f32 %v2731_v13, %v2819_v56 }
0x1088   :  { %2479 = vmatprep.subr.bf16.mxu1 %v2633_v0 }
0x1089   :  { %2472 = vmatpush3.bf16.msra.mxu0 %v2789_v44 }
0x108a   :  { %2473 = vmatprep.subr.bf16.mxu0 %v2633_v0 }
0x108b   :  { %2481 = vmatpush3.bf16.msra.mxu1 %v2714_v12 }
0x108c   :  { %2482 = vmatprep.subr.bf16.mxu1 %v2633_v0 }
0x108d   :  { %2475 = vmatpush3.bf16.msra.mxu0 %v2803_v48 }
0x108e   :  { %2494 = vmatprep.subr.bf16.mxu0 %v2633_v0 }
0x1153   :  { %v1480_v30 = vpop.f32.mrb[18].mxu0 }
0x1154   :  { %v1484_v31 = vadd.f32 %v1480_v30, %v168_v8  ;;  %v2285_v32 = vpop.f32.mrb[19].mxu0 }
0x1156   :  { %2593 = vtanh.f32 %v1484_v31  ;;  %v1943_v35 = vmul.f32 -1.442695, %v1484_v31 }
0x1159   :  { %v1384_v29 = vpop.f32.mrb[12].mxu1 }
0x115a   :  { %v1385_v33 = vadd.f32 %v2845_v60, %v1384_v29  ;;  %v2274_v34 = vpop.f32.mrb[13].mxu1 }
0x115c   :  { %2595 = vtanh.f32 %v1385_v33  ;;  %v1941_v37 = vmul.f32 -1.442695, %v1385_v33 }
0x115d   :  { %2597 = vpow2.f32 %v1943_v35 }
0x115e   :  { %2599 = vpow2.f32 %v1941_v37 }
0x1160   :  { %v2594_v51 = vpop.eup %2593 }
0x1161   :  { %1494 = vrot.lane.b32.xlu1 %v2594_v51, %s2636_s21 }
0x1166   :  { %v2596_v12 = vpop.eup %2595 }
0x1167   :  { %1397 = vrot.lane.b32.xlu0 %v2596_v12, %s2636_s21  ;;  %v2598_v56 = vpop.eup %2597 }
0x1168   :  { %v1488_v38 = vadd.f32 1.0, %v2598_v56  ;;  %v2600_v40 = vpop.eup %2599 }
0x1169   :  { %v1391_v41 = vadd.f32 1.0, %v2600_v40 }
0x116a   :  { %2601 = vrcp.f32 %v1488_v38 }
0x116b   :  { %2603 = vrcp.f32 %v1391_v41 }
0x1174   :  { %v2602_v42 = vpop.eup %2601 }
0x1175   :  { %v2604_v46 = vpop.eup %2603  ;;  %v1492_v50 = vmul.f32 %v2602_v42, %v3004_v17 }
0x1176   :  { %v1395_v58 = vmul.f32 %v2604_v46, %v3008_v20 }
0x11d3   :  { %v1495_v43 = vpop.permute.xlu1 %1494 }
0x11d4   :  { %v1497_v45 = vmul.f32 %v2602_v42, %v1495_v43 }
0x11d6   :  { %1499 = vrot.lane.b32.xlu1 %v1497_v45, %s2637_s3 }
0x11d9   :  { %v1398_v47 = vpop.permute.xlu0 %1397 }
0x11da   :  { %v1400_v49 = vmul.f32 %v2604_v46, %v1398_v47 }
0x11dc   :  { %1402 = vrot.lane.b32.xlu0 %v1400_v49, %s2637_s3 }
0x1248   :  { %v1500_v57 = vpop.permute.xlu1 %1499 }
0x1249   :  { %v1502_v52 = vadd.f32 %v1500_v57, %v1492_v50 }
0x124b   :  { %2605 = vtanh.f32 %v1502_v52 }
0x124e   :  { %v1403_v59 = vpop.permute.xlu0 %1402 }
0x124f   :  { %v1405_v61 = vadd.f32 %v1403_v59, %v1395_v58  ;;  %v1820_v58 = vld [vmem:[%s3105_s6 + $0x10] sm:$0xff] }
0x1251   :  { %2607 = vtanh.f32 %v1405_v61 }
0x1255   :  { %v2606_v62 = vpop.eup %2605 }
0x1256   :  { %1505 = vrot.lane.b32.xlu1 %v2606_v62, %s2636_s21 }
0x125b   :  { %v2608_v63 = vpop.eup %2607 }
0x125c   :  { %1408 = vrot.lane.b32.xlu0 %v2608_v63, %s2636_s21 }
0x12c8   :  { %v1506_v1 = vpop.permute.xlu1 %1505 }
0x12c9   :  { %v1508_v53 = vmul.f32 %v2602_v42, %v1506_v1 }
0x12cb   :  { %1510 = vrot.lane.b32.xlu0 %v1508_v53, %s2637_s3 }
0x12ce   :  { %v1409_v2 = vpop.permute.xlu0 %1408 }
0x12cf   :  { %v1411_v3 = vmul.f32 %v2604_v46, %v1409_v2 }
0x12d1   :  { %1514 = vrot.lane.b32.xlu1 %v1411_v3, %s2636_s21  ;;  %v1950_v3 = vld [vmem:[%s3106_s7] ss:$0 sm:$0xff] }
0x133d   :  { %v1511_v5 = vpop.permute.xlu0 %1510 }
0x133e   :  { %2314 = vmatmul.mubr.msk.f32.vlgmr.msra.gmra.mrb[14].mxu1 %vm195_vm2, %v1511_v5 }
0x133f   :  { %2484 = vmatpush3.bf16.msra.mxu1 %v2760_v36  ;;  %2332 = vmatprep.mubr.msk.f32.mxu1 %vm2634_vm1, %v2635_v4  ;;  %v173_v36 = vadd.f32 %v2817_v55, %v2731_v13 }
0x1340   :  { %2485 = vmatprep.subr.bf16.mxu1 %v2633_v0 }
0x1343   :  { %2487 = vmatpush3.bf16.msra.mxu1 %v2771_v39  ;;  %v1515_v6 = vpop.permute.xlu1 %1514 }
0x1344   :  { %2488 = vmatprep.subr.bf16.mxu1 %v2633_v0  ;;  %v1517_v7 = vsel %vm195_vm2, %v1511_v5, %v1515_v6 }
0x1345   :  { %2303 = vmatmul.mubr.msk.f32.vlgmr.msra.gmra.mrb[20].mxu0 %vm299_vm3, %v1517_v7 }
0x1346   :  { %2343 = vmatprep.mubr.msk.f32.mxu0 %vm2634_vm1, %v2635_v4 }
0x1347   :  { %2490 = vmatpush3.bf16.msra.mxu1 %v2789_v44 }
0x1348   :  { %2491 = vmatprep.subr.bf16.mxu1 %v2633_v0 }
0x134b   :  { %2493 = vmatpush3.bf16.msra.mxu1 %v2803_v48 }
0x1411   :  { %v1683_v39 = vpop.f32.mrb[14].mxu1 }
0x1412   :  { %v1687_v9 = vadd.f32 %v1683_v39, %v173_v36  ;;  %v2315_v10 = vpop.f32.mrb[15].mxu1 }
0x1414   :  { %2609 = vtanh.f32 %v1687_v9  ;;  %v1947_v16 = vmul.f32 -1.442695, %v1687_v9 }
0x1418   :  { %v1587_v11 = vpop.f32.mrb[20].mxu0 }
0x1419   :  { %v1588_v14 = vadd.f32 %v2845_v60, %v1587_v11  ;;  %v2304_v15 = vpop.f32.mrb[21].mxu0 }
0x141b   :  { %2611 = vtanh.f32 %v1588_v14  ;;  %v1945_v48 = vmul.f32 -1.442695, %v1588_v14 }
0x141c   :  { %2613 = vpow2.f32 %v1947_v16 }
0x141d   :  { %2615 = vpow2.f32 %v1945_v48 }
0x141e   :  { %v2610_v44 = vpop.eup %2609 }
0x141f   :  { %1697 = vrot.lane.b32.xlu1 %v2610_v44, %s2636_s21 }
0x1425   :  { %v2612_v4 = vpop.eup %2611 }
0x1426   :  { %1600 = vrot.lane.b32.xlu0 %v2612_v4, %s2636_s21  ;;  %v2614_v13 = vpop.eup %2613 }
0x1427   :  { %v1691_v55 = vadd.f32 1.0, %v2614_v13  ;;  %v2616_v17 = vpop.eup %2615 }
0x1428   :  { %v1594_v18 = vadd.f32 1.0, %v2616_v17 }
0x1429   :  { %2617 = vrcp.f32 %v1691_v55 }
0x142a   :  { %2619 = vrcp.f32 %v1594_v18 }
0x1433   :  { %v2618_v19 = vpop.eup %2617 }
0x1434   :  { %v2620_v21 = vpop.eup %2619  ;;  %v1695_v24 = vmul.f32 %v2618_v19, %v1502_v52  ;;  %v1819_v52 = vld [vmem:[%s3105_s6 + $0x8] sm:$0xff] }
0x1435   :  { %v1598_v27 = vmul.f32 %v2620_v21, %v1405_v61  ;;  %v1821_v61 = vld [vmem:[%s3105_s6 + $0x18] sm:$0xff] }
0x1436   :  { %v2498_v62 = vpack.c.bf16 %v1821_v61, %v1820_v58 }
0x1491   :  { %v1698_v20 = vpop.permute.xlu1 %1697 }
0x1492   :  { %v1700_v54 = vmul.f32 %v2618_v19, %v1698_v20 }
0x1494   :  { %1702 = vrot.lane.b32.xlu1 %v1700_v54, %s2637_s3 }
0x1498   :  { %v1601_v22 = vpop.permute.xlu0 %1600 }
0x1499   :  { %v1603_v23 = vmul.f32 %v2620_v21, %v1601_v22 }
0x149b   :  { %1605 = vrot.lane.b32.xlu0 %v1603_v23, %s2637_s3 }
0x1506   :  { %v1703_v25 = vpop.permute.xlu1 %1702 }
0x1507   :  { %v1705_v26 = vadd.f32 %v1703_v25, %v1695_v24 }
0x1509   :  { %2621 = vtanh.f32 %v1705_v26 }
0x150d   :  { %v1606_v28 = vpop.permute.xlu0 %1605 }
0x150e   :  { %v1608_v8 = vadd.f32 %v1606_v28, %v1598_v27 }
0x1510   :  { %2623 = vtanh.f32 %v1608_v8 }
0x1513   :  { %v2622_v30 = vpop.eup %2621 }
0x1514   :  { %1708 = vrot.lane.b32.xlu1 %v2622_v30, %s2636_s21 }
0x151a   :  { %v2624_v31 = vpop.eup %2623 }
0x151b   :  { %1611 = vrot.lane.b32.xlu0 %v2624_v31, %s2636_s21 }
0x1586   :  { %v1709_v32 = vpop.permute.xlu1 %1708 }
0x1587   :  { %v1711_v29 = vmul.f32 %v2618_v19, %v1709_v32 }
0x1589   :  { %1713 = vrot.lane.b32.xlu0 %v1711_v29, %s2637_s3 }
0x158d   :  { %v1612_v33 = vpop.permute.xlu0 %1611 }
0x158e   :  { %v1614_v34 = vmul.f32 %v2620_v21, %v1612_v33 }
0x1590   :  { %1717 = vrot.lane.b32.xlu1 %v1614_v34, %s2636_s21 }
0x15fb   :  { %v1714_v51 = vpop.permute.xlu0 %1713 }
0x1602   :  { %v1718_v12 = vpop.permute.xlu1 %1717 }
0x1603   :  { %v1720_v35 = vsel %vm195_vm2, %v1714_v51, %v1718_v12 }
0x1604   :  { %2333 = vmatmul.mubr.msk.f32.vlgmr.msra.gmra.mrb[16].mxu1 %vm299_vm3, %v1720_v35 }
0x16d7   :  { %v1790_v37 = vpop.f32.mrb[16].mxu1 }
0x16d8   :  { %v1791_v56 = vadd.f32 %v2845_v60, %v1790_v37  ;;  %v2334_v38 = vpop.f32.mrb[17].mxu1  ;;  %v1818_v60 = vld [vmem:[%s3105_s6] sm:$0xff] }
0x16d9   :  { %v2495_v59 = vpack.c.bf16 %v1819_v52, %v1818_v60 }
0x16da   :  { %2625 = vtanh.f32 %v1791_v56  ;;  %v1949_v41 = vmul.f32 -1.442695, %v1791_v56 }
0x16db   :  { %2496 = vmatpush3.bf16.msra.mxu0 %v2495_v59 }
0x16dc   :  { %2627 = vpow2.f32 %v1949_v41  ;;  %2497 = vmatprep.subr.bf16.mxu0 %v2633_v0 }
0x16df   :  { %2499 = vmatpush3.bf16.msra.mxu0 %v2498_v62 }
0x16e4   :  { %v2626_v40 = vpop.eup %2625 }
0x16e5   :  { %1803 = vrot.lane.b32.xlu0 %v2626_v40, %s2636_s21 }
0x16e6   :  { %v2628_v42 = vpop.eup %2627 }
0x16e7   :  { %v1797_v43 = vadd.f32 1.0, %v2628_v42 }
0x16e9   :  { %2629 = vrcp.f32 %v1797_v43 }
0x16f3   :  { %v2630_v45 = vpop.eup %2629 }
0x16f4   :  { %v1801_v49 = vmul.f32 %v2630_v45, %v1608_v8 }
0x1757   :  { %v1804_v46 = vpop.permute.xlu0 %1803 }
0x1758   :  { %v1806_v47 = vmul.f32 %v2630_v45, %v1804_v46 }
0x175a   :  { %1808 = vrot.lane.b32.xlu1 %v1806_v47, %s2637_s3 }
0x17cc   :  { %v1809_v50 = vpop.permute.xlu1 %1808 }
0x17cd   :  { %v1811_v57 = vadd.f32 %v1809_v50, %v1801_v49 }
0x17cf   :  { %2631 = vtanh.f32 %v1811_v57 }
0x17d9   :  { %v2632_v63 = vpop.eup %2631 }
0x17da   :  { %1814 = vrot.lane.b32.xlu0 %v2632_v63, %s2636_s21 }
0x184c   :  { %v1815_v1 = vpop.permute.xlu0 %1814 }
0x184d   :  { %v1817_v53 = vmul.f32 %v2630_v45, %v1815_v1 }
0x184f   :  { %1830 = vrot.lane.b32.xlu1 %v1817_v53, %s2637_s3 }
0x18c1   :  { %v1831_v2 = vpop.permute.xlu1 %1830 }
0x18c2   :  { %2344 = vmatmul.mubr.msk.f32.vlgmr.msra.gmra.mrb[22].mxu0 %vm195_vm2, %v1831_v2 }
0x1995   :  { %v1900_v5 = vpop.f32.mrb[22].mxu0 }
0x1996   :  { %v1901_v6 = vadd.f32 %v1950_v3, %v1900_v5  ;;  %v2345_v7 = vpop.f32.mrb[23].mxu0 }
0x1998   :  { %1904 = vst [vmem:[%s3107_s8] sm:$0xff] %v1901_v6 }

</bundles_post_ra>
